<compile_context>
chip_gen: v5e
topology: v5e:2x2
jax: 0.10.0
libtpu: 0.0.40
codegen_flags: <defaults>
</compile_context>

<pallas_src>
import jax
import jax.numpy as jnp
from jax import lax
from jax.experimental import pallas as pl
from jax.experimental.pallas import tpu as pltpu

WPAD = 128  # hidden width padded to the 128-lane boundary


def fastnn_kernel(
    x_ref,      # (TILE_N, TILE_K) f32    batch rows x p-chunk
    wf_ref,     # (TILE_K, WPAD)   bf16   folded front-end chunk (dp/rs/vs/W1)
    b1_ref,     # (1, WPAD)        f32
    w2_ref,     # (WPAD, WPAD)     bf16
    b2_ref,     # (1, WPAD)        f32
    w3_ref,     # (WPAD, WPAD)     bf16
    b3_ref,     # (1, WPAD)        f32
    wout_ref,   # (1, WPAD)        bf16   output layer as a row
    bout_ref,   # (1, 1)           f32
    out_ref,    # (1, TILE_N)      f32    lane-dense output row
    acc_ref,    # (TILE_N, WPAD)   f32    layer-1 accumulator (VMEM scratch)
):
    k = pl.program_id(1)

    @pl.when(k == 0)
    def _init():
        acc_ref[...] = jnp.zeros_like(acc_ref)

    # Layer 1 partial sum over this p-chunk.  f32 x is cast to bf16 on the VPU
    # (hidden under the MXU) instead of in a separate wrapper-side XLA pass.
    x = x_ref[...].astype(jnp.bfloat16)
    acc_ref[...] += jnp.dot(x, wf_ref[...], preferred_element_type=jnp.float32)

    @pl.when(k == pl.num_programs(1) - 1)
    def _finalize():
        # bias + ReLU + bf16 cast fused: inter-layer activation that round-trips
        # VMEM is 2 B/elem, accumulation stays f32.
        h = jnp.maximum(acc_ref[...] + b1_ref[...], 0.0).astype(jnp.bfloat16)
        h = jnp.maximum(
            jnp.dot(h, w2_ref[...], preferred_element_type=jnp.float32) + b2_ref[...],
            0.0).astype(jnp.bfloat16)
        h = jnp.maximum(
            jnp.dot(h, w3_ref[...], preferred_element_type=jnp.float32) + b3_ref[...],
            0.0).astype(jnp.bfloat16)
        # Output layer: (1, WPAD) x (TILE_N, WPAD)^T -> (1, TILE_N).  Lane-dense
        # store; the reduction rides the otherwise-idle MXU instead of the XLU.
        out = lax.dot_general(
            wout_ref[...], h,
            dimension_numbers=(((1,), (1,)), ((), ())),
            preferred_element_type=jnp.float32,
        ) + bout_ref[...]
        out_ref[...] = out.astype(out_ref.dtype)


def _pick_vmem_limit_bytes():
    """~100 MiB on 128-MiB VMEM parts (v5e/v6e), 48 MiB on 64-MiB parts (v7x)."""
    try:
        cap = pltpu.get_tpu_info().vmem_capacity_bytes
    except Exception:
        return 48 * 1024 * 1024
    if cap >= 96 * 1024 * 1024:
        return 100 * 1024 * 1024
    return 48 * 1024 * 1024


def fastnn_forward(x, kparams, *, tile_n=512, tile_k=1024):
    """x: (n, p) float32.  kparams: folded/padded weights from make_params."""
    n, p = x.shape
    tile_n = min(tile_n, n)
    tile_k = min(tile_k, p)
    assert n % tile_n == 0, "demo keeps n a multiple of tile_n"
    assert p % tile_k == 0, "demo keeps p a multiple of tile_k"
    assert tile_n % 128 == 0 or tile_n == n
    assert tile_k % 128 == 0 or tile_k == p

    weights = (
        kparams["w_front"], kparams["b1"],
        kparams["w2"], kparams["b2"],
        kparams["w3"], kparams["b3"],
        kparams["wout_row"], kparams["bout"],
    )

    const_map = lambda i, k: (0, 0)       # resident in VMEM across all grid steps
    in_specs = [
        pl.BlockSpec((tile_n, tile_k), lambda i, k: (i, k)),   # x  (f32; cast in-kernel)
        pl.BlockSpec((tile_k, WPAD), lambda i, k: (k, 0)),     # w_front p-chunk
    ] + [pl.BlockSpec(w.shape, const_map) for w in weights[1:]]

    grid = (n // tile_n, p // tile_k)     # (batch: parallel, p-reduction: arbitrary)

    flops = 2 * n * (p * WPAD + 2 * WPAD * WPAD + WPAD)
    bytes_accessed = (4 * n * p + 2 * p * WPAD + 2 * 2 * WPAD * WPAD
                      + 4 * 4 * WPAD + 4 * n)

    out = pl.pallas_call(
        fastnn_kernel,
        out_shape=jax.ShapeDtypeStruct((1, n), jnp.float32),
        grid=grid,
        in_specs=in_specs,
        out_specs=pl.BlockSpec((1, tile_n), lambda i, k: (0, i)),
        scratch_shapes=[pltpu.VMEM((tile_n, WPAD), jnp.float32)],
        compiler_params=pltpu.CompilerParams(
            dimension_semantics=("parallel", "arbitrary"),
            vmem_limit_bytes=_pick_vmem_limit_bytes(),
        ),
        cost_estimate=pl.CostEstimate(
            flops=flops, transcendentals=0, bytes_accessed=bytes_accessed),
    )(x, *weights)
    return out.reshape(n, 1)


def make_params(key, p, r_bar, sparsity, width, depth):
    """Build PyTorch-convention raw weights, then fold + pad for the kernel.

    PyTorch: nn.Linear(in, out) stores weight of shape (out, in).
    """
    assert depth == 3, "script hardcodes depth=3 (two hidden-to-hidden layers)"
    keys = jax.random.split(key, 11)
    dp_mat = jax.random.normal(keys[0], (p, r_bar), jnp.float32) * 0.1   # x @ dp form
    rs_mat = jax.random.normal(keys[1], (r_bar, p), jnp.float32) * 0.1
    w_vs = jax.random.normal(keys[2], (sparsity, p), jnp.float32) * 0.1  # (sparsity, p)
    w1 = jax.random.normal(keys[3], (width, r_bar + sparsity), jnp.float32) * 0.1
    b1 = jax.random.normal(keys[4], (width,), jnp.float32) * 0.1
    w2 = jax.random.normal(keys[5], (width, width), jnp.float32) * 0.1
    b2 = jax.random.normal(keys[6], (width,), jnp.float32) * 0.1
    w3 = jax.random.normal(keys[7], (width, width), jnp.float32) * 0.1
    b3 = jax.random.normal(keys[8], (width,), jnp.float32) * 0.1
    wout = jax.random.normal(keys[9], (1, width), jnp.float32) * 0.1
    bout = jax.random.normal(keys[10], (1,), jnp.float32) * 0.1

    raw = {"dp": dp_mat, "rs": rs_mat, "w_vs": w_vs, "w1": w1, "b1": b1,
           "w2": w2, "b2": b2, "w3": w3, "b3": b3, "wout": wout, "bout": bout}

    # --- fold the front end (in f32, once, on host) ---
    w1a_t = w1[:, :r_bar].T          # (r_bar, width)     acts on x1
    w1b_t = w1[:, r_bar:].T          # (sparsity, width)  acts on x2
    vs_t = w_vs.T                    # (p, sparsity)
    w_front = dp_mat @ w1a_t + (vs_t - dp_mat @ (rs_mat @ vs_t)) @ w1b_t   # (p, width)

    # --- pad hidden width to 128 lanes ---
    def pad_cols(a):
        return jnp.pad(a, ((0, 0), (0, WPAD - a.shape[1])))

    def pad_square(a):
        return jnp.pad(a, ((0, WPAD - a.shape[0]), (0, WPAD - a.shape[1])))

    kparams = {
        "w_front": pad_cols(w_front).astype(jnp.bfloat16),       # (p, WPAD)
        "b1": pad_cols(b1[None, :]),                             # (1, WPAD) f32
        "w2": pad_square(w2.T).astype(jnp.bfloat16),             # (WPAD, WPAD)
        "b2": pad_cols(b2[None, :]),
        "w3": pad_square(w3.T).astype(jnp.bfloat16),
        "b3": pad_cols(b3[None, :]),
        "wout_row": pad_cols(wout).astype(jnp.bfloat16),         # (1, WPAD) bf16
        "bout": bout[None, :],                                   # (1, 1) f32
    }
    return kparams, raw


def fastnn_reference(x, raw):
    """Pure-JAX reference mirroring the PyTorch forward exactly (f32)."""
    x1 = x @ raw["dp"]
    x2 = (x - x1 @ raw["rs"]) @ raw["w_vs"].T
    h = jnp.concatenate([x1, x2], axis=-1)
    h = jnp.maximum(h @ raw["w1"].T + raw["b1"], 0.0)
    h = jnp.maximum(h @ raw["w2"].T + raw["b2"], 0.0)
    h = jnp.maximum(h @ raw["w3"].T + raw["b3"], 0.0)
    return h @ raw["wout"].T + raw["bout"]


if __name__ == "__main__":
    # Shapes chosen so the grid is (2 batch tiles, 2 p-chunks): exercises both the
    # "parallel" batch axis and the "arbitrary" reduction axis with its
    # accumulator init/finalize path, while staying small.
    n, p, r_bar, sparsity, width, depth = 1024, 256, 4, 8, 32, 3

    key = jax.random.PRNGKey(0)
    kx, kp = jax.random.split(key)
    x = jax.random.normal(kx, (n, p), jnp.float32)
    kparams, raw = make_params(kp, p, r_bar, sparsity, width, depth)

    pred = fastnn_forward(x, kparams, tile_n=512, tile_k=128)
    pred = jax.block_until_ready(pred)

    ref = fastnn_reference(x, raw)
    assert pred.shape == (n, 1)
    err = float(jnp.max(jnp.abs(pred - ref)))
    # bf16 matmul operands + f32-folded-then-bf16-cast front end -> precision
    # drift grows mildly with p; tolerance loosened accordingly (not a bug).
    assert jnp.allclose(pred, ref, atol=3e-2, rtol=3e-2), err

    print("KERNEL_OK")
</pallas_src>

<mosaic_0001>
module attributes {stable_mosaic.version = 11 : i64} {
  func.func @fastnn_kernel(%arg0: i32, %arg1: i32, %arg2: memref<512x128xf32, #tpu.memory_space<vmem>>, %arg3: memref<128x128xbf16, #tpu.memory_space<vmem>>, %arg4: memref<1x128xf32, #tpu.memory_space<vmem>>, %arg5: memref<128x128xbf16, #tpu.memory_space<vmem>>, %arg6: memref<1x128xf32, #tpu.memory_space<vmem>>, %arg7: memref<128x128xbf16, #tpu.memory_space<vmem>>, %arg8: memref<1x128xf32, #tpu.memory_space<vmem>>, %arg9: memref<1x128xbf16, #tpu.memory_space<vmem>>, %arg10: memref<1x1xf32, #tpu.memory_space<vmem>>, %arg11: memref<1x512xf32, #tpu.memory_space<vmem>>, %arg12: memref<512x128xf32, #tpu.memory_space<vmem>>) attributes {dimension_semantics = [#tpu.dimension_semantics<parallel>, #tpu.dimension_semantics<arbitrary>], iteration_bounds = array<i64: 2, 2>, scalar_prefetch = 0 : i64, scratch_operands = 1 : i64, tpu.core_type = #tpu.core_type<tc>, window_params = [{transform_indices = @transform_0, window_bounds = array<i64: 512, 128>}, {transform_indices = @transform_1, window_bounds = array<i64: 128, 128>}, {pipeline_mode = #tpu.pipeline_mode<synchronous>, transform_indices = @transform_2, window_bounds = array<i64: 1, 128>}, {pipeline_mode = #tpu.pipeline_mode<synchronous>, transform_indices = @transform_3, window_bounds = array<i64: 128, 128>}, {pipeline_mode = #tpu.pipeline_mode<synchronous>, transform_indices = @transform_4, window_bounds = array<i64: 1, 128>}, {pipeline_mode = #tpu.pipeline_mode<synchronous>, transform_indices = @transform_5, window_bounds = array<i64: 128, 128>}, {pipeline_mode = #tpu.pipeline_mode<synchronous>, transform_indices = @transform_6, window_bounds = array<i64: 1, 128>}, {pipeline_mode = #tpu.pipeline_mode<synchronous>, transform_indices = @transform_7, window_bounds = array<i64: 1, 128>}, {pipeline_mode = #tpu.pipeline_mode<synchronous>, transform_indices = @transform_8, window_bounds = array<i64: 1, 1>}, {transform_indices = @transform_9, window_bounds = array<i64: 1, 512>}]} {
    %c0_i32 = arith.constant 0 : i32
    %0 = arith.cmpi eq, %arg1, %c0_i32 : i32
    %1 = arith.extui %0 : i1 to i32
    %c0_i32_0 = arith.constant 0 : i32
    %2 = arith.cmpi ne, %1, %c0_i32_0 : i32
    scf.if %2 {
      %cst_9 = arith.constant 0.000000e+00 : f32
      %13 = vector.broadcast %cst_9 : f32 to vector<512x128xf32>
      %c0_10 = arith.constant 0 : index
      %c0_11 = arith.constant 0 : index
      %14 = vector.load %arg12[%c0_10, %c0_11] : memref<512x128xf32, #tpu.memory_space<vmem>>, vector<512x128xf32>
      tpu.vector_store %arg12[%c0_10, %c0_11], %13 {strides = array<i32>} : memref<512x128xf32, #tpu.memory_space<vmem>>, vector<512x128xf32>,
    } else {
    }
    %c0 = arith.constant 0 : index
    %c0_1 = arith.constant 0 : index
    %3 = vector.load %arg2[%c0, %c0_1] : memref<512x128xf32, #tpu.memory_space<vmem>>, vector<512x128xf32>
    %4 = arith.truncf %3 : vector<512x128xf32> to vector<512x128xbf16>
    %c0_2 = arith.constant 0 : index
    %c0_3 = arith.constant 0 : index
    %5 = vector.load %arg12[%c0_2, %c0_3] : memref<512x128xf32, #tpu.memory_space<vmem>>, vector<512x128xf32>
    %c0_4 = arith.constant 0 : index
    %c0_5 = arith.constant 0 : index
    %6 = vector.load %arg3[%c0_4, %c0_5] : memref<128x128xbf16, #tpu.memory_space<vmem>>, vector<128x128xbf16>
    %cst = arith.constant dense<0.000000e+00> : vector<512x128xf32>
    %7 = tpu.matmul %4, %6, %cst {dimension_numbers = #tpu.dot_dimension_numbers<[1], [0], [0], [1], [0, 0, 1, 1], [], []>} : vector<512x128xbf16>, vector<128x128xbf16>, vector<512x128xf32> -> vector<512x128xf32>
    %8 = arith.addf %5, %7 : vector<512x128xf32>
    %c0_6 = arith.constant 0 : index
    %c0_7 = arith.constant 0 : index
    %9 = vector.load %arg12[%c0_6, %c0_7] : memref<512x128xf32, #tpu.memory_space<vmem>>, vector<512x128xf32>
    tpu.vector_store %arg12[%c0_6, %c0_7], %8 {strides = array<i32>} : memref<512x128xf32, #tpu.memory_space<vmem>>, vector<512x128xf32>,
    %c1_i32 = arith.constant 1 : i32
    %10 = arith.cmpi eq, %arg1, %c1_i32 : i32
    %11 = arith.extui %10 : i1 to i32
    %c0_i32_8 = arith.constant 0 : i32
    %12 = arith.cmpi ne, %11, %c0_i32_8 : i32
    scf.if %12 {
      %c0_9 = arith.constant 0 : index
      %c0_10 = arith.constant 0 : index
      %13 = vector.load %arg12[%c0_9, %c0_10] : memref<512x128xf32, #tpu.memory_space<vmem>>, vector<512x128xf32>
      %c0_11 = arith.constant 0 : index
      %c0_12 = arith.constant 0 : index
      %14 = vector.load %arg4[%c0_11, %c0_12] : memref<1x128xf32, #tpu.memory_space<vmem>>, vector<1x128xf32>
      %15 = vector.broadcast %14 : vector<1x128xf32> to vector<512x128xf32>
      %16 = arith.addf %13, %15 : vector<512x128xf32>
      %cst_13 = arith.constant 0.000000e+00 : f32
      %17 = vector.broadcast %cst_13 : f32 to vector<512x128xf32>
      %18 = arith.maximumf %16, %17 : vector<512x128xf32>
      %19 = arith.truncf %18 : vector<512x128xf32> to vector<512x128xbf16>
      %c0_14 = arith.constant 0 : index
      %c0_15 = arith.constant 0 : index
      %20 = vector.load %arg5[%c0_14, %c0_15] : memref<128x128xbf16, #tpu.memory_space<vmem>>, vector<128x128xbf16>
      %cst_16 = arith.constant dense<0.000000e+00> : vector<512x128xf32>
      %21 = tpu.matmul %19, %20, %cst_16 {dimension_numbers = #tpu.dot_dimension_numbers<[1], [0], [0], [1], [0, 0, 1, 1], [], []>} : vector<512x128xbf16>, vector<128x128xbf16>, vector<512x128xf32> -> vector<512x128xf32>
      %c0_17 = arith.constant 0 : index
      %c0_18 = arith.constant 0 : index
      %22 = vector.load %arg6[%c0_17, %c0_18] : memref<1x128xf32, #tpu.memory_space<vmem>>, vector<1x128xf32>
      %23 = vector.broadcast %22 : vector<1x128xf32> to vector<512x128xf32>
      %24 = arith.addf %21, %23 : vector<512x128xf32>
      %cst_19 = arith.constant 0.000000e+00 : f32
      %25 = vector.broadcast %cst_19 : f32 to vector<512x128xf32>
      %26 = arith.maximumf %24, %25 : vector<512x128xf32>
      %27 = arith.truncf %26 : vector<512x128xf32> to vector<512x128xbf16>
      %c0_20 = arith.constant 0 : index
      %c0_21 = arith.constant 0 : index
      %28 = vector.load %arg7[%c0_20, %c0_21] : memref<128x128xbf16, #tpu.memory_space<vmem>>, vector<128x128xbf16>
      %cst_22 = arith.constant dense<0.000000e+00> : vector<512x128xf32>
      %29 = tpu.matmul %27, %28, %cst_22 {dimension_numbers = #tpu.dot_dimension_numbers<[1], [0], [0], [1], [0, 0, 1, 1], [], []>} : vector<512x128xbf16>, vector<128x128xbf16>, vector<512x128xf32> -> vector<512x128xf32>
      %c0_23 = arith.constant 0 : index
      %c0_24 = arith.constant 0 : index
      %30 = vector.load %arg8[%c0_23, %c0_24] : memref<1x128xf32, #tpu.memory_space<vmem>>, vector<1x128xf32>
      %31 = vector.broadcast %30 : vector<1x128xf32> to vector<512x128xf32>
      %32 = arith.addf %29, %31 : vector<512x128xf32>
      %cst_25 = arith.constant 0.000000e+00 : f32
      %33 = vector.broadcast %cst_25 : f32 to vector<512x128xf32>
      %34 = arith.maximumf %32, %33 : vector<512x128xf32>
      %35 = arith.truncf %34 : vector<512x128xf32> to vector<512x128xbf16>
      %c0_26 = arith.constant 0 : index
      %c0_27 = arith.constant 0 : index
      %36 = vector.load %arg9[%c0_26, %c0_27] : memref<1x128xbf16, #tpu.memory_space<vmem>>, vector<1x128xbf16>
      %cst_28 = arith.constant dense<0.000000e+00> : vector<1x512xf32>
      %37 = tpu.matmul %36, %35, %cst_28 {dimension_numbers = #tpu.dot_dimension_numbers<[1], [1], [0], [0], [0, 0, 1, 0], [], []>} : vector<1x128xbf16>, vector<512x128xbf16>, vector<1x512xf32> -> vector<1x512xf32>
      %c0_29 = arith.constant 0 : index
      %c0_30 = arith.constant 0 : index
      %38 = vector.load %arg10[%c0_29, %c0_30] : memref<1x1xf32, #tpu.memory_space<vmem>>, vector<1x1xf32>
      %39 = vector.broadcast %38 : vector<1x1xf32> to vector<1x512xf32>
      %40 = arith.addf %37, %39 : vector<1x512xf32>
      %c0_31 = arith.constant 0 : index
      %c0_32 = arith.constant 0 : index
      %41 = vector.load %arg11[%c0_31, %c0_32] : memref<1x512xf32, #tpu.memory_space<vmem>>, vector<1x512xf32>
      tpu.vector_store %arg11[%c0_31, %c0_32], %40 {strides = array<i32>} : memref<1x512xf32, #tpu.memory_space<vmem>>, vector<1x512xf32>,
    } else {
    }
    return
  }
  func.func @transform_0(%arg0: i32, %arg1: i32) -> (i32, i32) {
    %c0_i32 = arith.constant 0 : i32
    return %arg0, %arg1 : i32, i32
  }
  func.func @transform_1(%arg0: i32, %arg1: i32) -> (i32, i32) {
    %c0_i32 = arith.constant 0 : i32
    %c0_i32_0 = arith.constant 0 : i32
    return %arg1, %c0_i32 : i32, i32
  }
  func.func @transform_2(%arg0: i32, %arg1: i32) -> (i32, i32) {
    %c0_i32 = arith.constant 0 : i32
    %c0_i32_0 = arith.constant 0 : i32
    %c0_i32_1 = arith.constant 0 : i32
    return %c0_i32, %c0_i32_0 : i32, i32
  }
  func.func @transform_3(%arg0: i32, %arg1: i32) -> (i32, i32) {
    %c0_i32 = arith.constant 0 : i32
    %c0_i32_0 = arith.constant 0 : i32
    %c0_i32_1 = arith.constant 0 : i32
    return %c0_i32, %c0_i32_0 : i32, i32
  }
  func.func @transform_4(%arg0: i32, %arg1: i32) -> (i32, i32) {
    %c0_i32 = arith.constant 0 : i32
    %c0_i32_0 = arith.constant 0 : i32
    %c0_i32_1 = arith.constant 0 : i32
    return %c0_i32, %c0_i32_0 : i32, i32
  }
  func.func @transform_5(%arg0: i32, %arg1: i32) -> (i32, i32) {
    %c0_i32 = arith.constant 0 : i32
    %c0_i32_0 = arith.constant 0 : i32
    %c0_i32_1 = arith.constant 0 : i32
    return %c0_i32, %c0_i32_0 : i32, i32
  }
  func.func @transform_6(%arg0: i32, %arg1: i32) -> (i32, i32) {
    %c0_i32 = arith.constant 0 : i32
    %c0_i32_0 = arith.constant 0 : i32
    %c0_i32_1 = arith.constant 0 : i32
    return %c0_i32, %c0_i32_0 : i32, i32
  }
  func.func @transform_7(%arg0: i32, %arg1: i32) -> (i32, i32) {
    %c0_i32 = arith.constant 0 : i32
    %c0_i32_0 = arith.constant 0 : i32
    %c0_i32_1 = arith.constant 0 : i32
    return %c0_i32, %c0_i32_0 : i32, i32
  }
  func.func @transform_8(%arg0: i32, %arg1: i32) -> (i32, i32) {
    %c0_i32 = arith.constant 0 : i32
    %c0_i32_0 = arith.constant 0 : i32
    %c0_i32_1 = arith.constant 0 : i32
    return %c0_i32, %c0_i32_0 : i32, i32
  }
  func.func @transform_9(%arg0: i32, %arg1: i32) -> (i32, i32) {
    %c0_i32 = arith.constant 0 : i32
    %c0_i32_0 = arith.constant 0 : i32
    return %c0_i32, %arg0 : i32, i32
  }
}

</mosaic_0001>

<bundles_post_ra>
// kernel: tpu_custom_call.1
= control target key start
LH: loop header
LB: loop body
LE: loop exit
PB: predicated region body
PF: predicated region fallthrough
CT: control target
= control target key end

     0   :  { %s3555_s0 = inlined_call_operand.hbm [shape: f32[1024,256], index: 0, kind: input, shape index: {}]   ;;  %s3556_s1 = inlined_call_operand.hbm [shape: bf16[256,128], index: 1, kind: input, shape index: {}]   ;;  %s3557_s2 = inlined_call_operand.vmem [shape: f32[1,128], index: 2, kind: input, shape index: {}]   ;;  %s3558_s3 = inlined_call_operand.hbm [shape: bf16[128,128], index: 3, kind: input, shape index: {}]   ;;  %s3559_s4 = inlined_call_operand.vmem [shape: f32[1,128], index: 4, kind: input, shape index: {}]   ;;  %s3560_s5 = inlined_call_operand.hbm [shape: bf16[128,128], index: 5, kind: input, shape index: {}]   ;;  %s3561_s6 = inlined_call_operand.vmem [shape: f32[1,128], index: 6, kind: input, shape index: {}]   ;;  %s3562_s7 = inlined_call_operand.vmem [shape: bf16[1,128], index: 7, kind: input, shape index: {}]   ;;  %s3563_s8 = inlined_call_operand.<no memory space> [shape: f32[1,1], index: 8, kind: input, shape index: {}]   ;;  %s3564_s9 = inlined_call_operand.hbm [shape: f32[1,1024], index: 9, kind: output, shape index: {}]  }
   0x1   :  { %3577 = sst [smem:[#allocation29_spill]] %s3555_s0  ;;  %v14_v0 = vstv %s3563_s8 }
   0x2   :  { %3578 = sst [smem:[#allocation30_spill]] %s3557_s2  ;;  %15 = vst [vmem:[#allocation3] sm:$0x1] %v14_v0 }
   0x3   :  { %3579 = sst [smem:[#allocation31_spill]] %s3558_s3 }
   0x4   :  { %3580 = sst [smem:[#allocation32_spill]] %s3559_s4 }
   0x5   :  { %3581 = sst [smem:[#allocation33_spill]] %s3560_s5 }
   0x6   :  { %3582 = sst [smem:[#allocation34_spill]] %s3561_s6 }
   0x7   :  { %3583 = sst [smem:[#allocation35_spill]] %s3562_s7 }
   0x8   :  { %3584 = sst [smem:[#allocation36_spill]] %s3564_s9 }
   0x9   :  { %16 = vsyncpa [#allocation5], 0 }
   0xa   :  { %18 = vsyncpa [#allocation5 + $0x1], 0 }
   0xb   :  { %19 = vsyncpa [#allocation8], 0 }
   0xc   :  { %21 = vsyncpa [#allocation8 + $0x1], 0 }
   0xd   :  { %22 = vsyncpa [#allocation11], 0 }
   0xe   :  { %23 = vsyncpa [#allocation6], 0 }
   0xf   :  { %25 = vsyncpa [#allocation6 + $0x1], 0  ;;  %s2848_s11 = smov 0   ;;  %s2850_s12 = smov 0  }
  0x10   :  { %s2852_s13 = smov 0   ;;  %s2854_s14 = smov 0  }
  0x11   :  { %s2856_s15 = smov 0   ;;  %s2858_s16 = smov 0  }
  0x12   :  { %s2860_s8 = smov 0   ;;  %s2862_s17 = smov 0  }
  0x13   :  { %s2864_s18 = smov 0   ;;  %s2866_s19 = smov 0  }
  0x14   :  { %s2868_s20 = smov 0   ;;  %s2870_s21 = smov 0  }
  0x15   :  { %s2872_s22 = smov 0   ;;  %s2874_s23 = smov 0  }
  0x16 LB: > { %3585 = sst [smem:[#allocation18_spill]] %s2732_s11  ;;  %s2915_s24 = sadd.s32 4294967295, %s2784_s23   ;;  %s2784_s23 = sphi %s2874_s23, %s31_s23   ;;  %s2780_s22 = sphi %s2872_s22, %s3624_s22   ;;  %s2776_s21 = sphi %s2870_s21, %s3635_s21   ;;  %s2772_s20 = sphi %s2868_s20, %s3622_s20   ;;  %s2768_s19 = sphi %s2866_s19, %s3634_s19   ;;  %s2764_s18 = sphi %s2864_s18, %s3633_s18   ;;  %s2760_s17 = sphi %s2862_s17, %s3632_s17   ;;  %s2756_s8 = sphi %s2860_s8, %s3631_s8   ;;  %s2752_s16 = sphi %s2858_s16, %s3630_s16   ;;  %s2748_s15 = sphi %s2856_s15, %s3629_s15   ;;  %s2744_s14 = sphi %s2854_s14, %s3628_s14   ;;  %s2740_s13 = sphi %s2852_s13, %s3619_s13   ;;  %s2736_s12 = sphi %s2850_s12, %s3627_s12   ;;  %s2732_s11 = sphi %s2848_s11, %s3626_s11  }
  0x17   : > { %3586 = sst [smem:[#allocation19_spill]] %s2740_s13  ;;  %s2157_s25 = sadd.s32 4294967294, %s2784_s23  }
  0x18   : > { %3587 = sst [smem:[#allocation20_spill]] %s2764_s18  ;;  %p65_p0 = scmp.ne.s32.totalorder %s2760_s17, %s2756_s8 }
  0x19   : > { %3588 = sst [smem:[#allocation21_spill]] %s2772_s20  ;;  %p66_p1 = scmp.eq.s32.totalorder %s2915_s24, 0 }
  0x1a   : > { %3589 = sst [smem:[#allocation22_spill]] %s2780_s22  ;;  %p91_p2 = scmp.ne.s32.totalorder %s2748_s15, %s2744_s14 }
  0x1b   : > { %p261_p3 = scmp.ne.s32.totalorder %s2740_s13, %s2736_s12  ;;  %p2925_p4 = por %p66_p1, %p65_p0 }
  0x1c   : > { %p262_p5 = scmp.eq.s32.totalorder %s2915_s24, 3  ;;  %p2932_p6 = por %p91_p2, %p66_p1 }
  0x1d   : > { %p267_p7 = scmp.ne.s32.totalorder %s2736_s12, %s2732_s11  ;;  %p268_p9 = scmp.eq.s32.totalorder %s2157_s25, 3 }
  0x1e   : > { %p2938_p8 = por %p262_p5, %p261_p3  ;;  %p2158_p10 = scmp.ge.s32.totalorder %s2784_s23, 1 }
  0x1f   : > { %p275_p11 = scmp.lt.s32.totalorder %s2784_s23, 5  ;;  %p2944_p12 = por %p268_p9, %p267_p7 }
  0x20   : > { %s3592_s28 = scalar_select %p2938_p8, 1, 0 }
  0x21   : > { %s3594_s29 = scalar_select %p2944_p12, 1, 0 }
  0x22   : > { %3593 = sst [smem:[#allocation23_spill]] %s3592_s28  ;;  %p2948_p13 = pnand %p2158_p10, %p275_p11 }
  0x23   : > { %3595 = sst [smem:[#allocation24_spill]] %s3594_s29  ;;  %s2786_s25 = smov [#allocation9]  }
  0x24   : > { %s3597_s3 = sld [smem:[#allocation31_spill]]  ;;  %p2357_p0 = pneg %p2948_p13 }
  0x25   : > { %s291_s11 = sshll.u32 %s2786_s25, 4  ;;  %s3598_s5 = sld [smem:[#allocation33_spill]]  ;;  %s292_s11 = int_to_ptr.vmem [resolvable:$true] %s291_s11 }
  0x26   : > { %p2358_p2 = pnand %p2357_p0, %p66_p1  ;;  %s3570_s14 = smov 64  }
  0x27   : > { %s2789_s25 = smov [#allocation10]   ;;  %s40_s9 = sadd.s32 1, %s2776_s21 }
  0x28   : > { %s308_s28 = sshll.u32 %s2789_s25, 4  ;;  %p41_p3 = scmp.ge.s32.totalorder %s40_s9, 2  ;;  %s309_s28 = int_to_ptr.vmem [resolvable:$true] %s308_s28 }
  0x29   : > { %s43_s29 = sadd.s32 1, %s2780_s22  ;;  %p59_p5 = scmp.ne.s32.totalorder %s2764_s18, %s2760_s17 }
  0x2a   : > { %s289_s8 = sshll.u32 %s3597_s3, 4  ;;  %s3571_s3 = smov 4   ;;  %s290_s8 = int_to_ptr.hbm [resolvable:$true] %s289_s8 }
  0x2b   : > { %s306_s10 = sshll.u32 %s3598_s5, 4  ;;  %s52_s5 = sadd.s32 1, %s2764_s18  ;;  %s307_s10 = int_to_ptr.hbm [resolvable:$true] %s306_s10 }
  0x2c   : > { %2360 = dma.hbm_to_vmem [thread:$0]  (!%p2358_p2), %s290_s8, 1024, %s292_s11, [#allocation8], %s3570_s14, %s3570_s14, %s3571_s3  }
  0x2d   : > { %2363 = dma.hbm_to_vmem [thread:$0]  (!%p2358_p2), %s307_s10, 1024, %s309_s28, [#allocation11], %s3570_s14, %s3570_s14, %s3571_s3  }
  0x2e   : > { %s3637_s9 = smov (%p41_p3, %s40_s9), 0  ;;  %s3639_s29 = smov (!%p41_p3, %s43_s29), %s2780_s22 }
  0x2f   : > { %3599 = sst [smem:[#allocation25_spill]] %s3637_s9  ;;  %s2978_s11 = ssub.s32 %s2776_s21, %s3637_s9 }
  0x30   : > { %p60_p7 = scmp.eq.s32.totalorder %s2784_s23, 0  ;;  %p45_p9 = scmp.ge.s32.totalorder %s3639_s29, 2 }
  0x31   : > { %p76_p10 = scmp.eq.s32.totalorder %s2978_s11, 0  ;;  %s251_s8 = sadd.s32 1, %s2740_s13 }
  0x32   : > { %p2984_p11 = por %p60_p7, %p59_p5  ;;  %s3641_s29 = smov (%p45_p9, %s3639_s29), 0 }
  0x33   : > { %3601 = sst [smem:[#allocation26_spill]] %s3641_s29  ;;  %p2377_p0 = scmp.lt.s32.totalorder %s2784_s23, 4 }
  0x34   : > { %s331_s10 = sand.u32 1, %s2764_s18   ;;  %s47_s25 = ssub.s32 %s2780_s22, %s3641_s29 }
  0x35   : > { %s49_s14 = sor.u32 %s2978_s11, %s47_s25  ;;  %p249_p2 = scmp.eq.s32.totalorder %s47_s25, 0 }
  0x36   : > { %p50_p3 = scmp.eq.s32.totalorder %s49_s14, 0  ;;  %s2162_s3 = sshll.u32 %s331_s10, 9 }
  0x37   : > { %s2997_s9 = scalar_select %p249_p2, %s2740_s13, %s251_s8  }
  0x38   : > { %s3000_s20 = scalar_select %p50_p3, %s2764_s18, %s52_s5  }
  0x39   : > { %3602 = sst [smem:[#allocation27_spill]] %s2997_s9  ;;  %s2277_s7 = sshll.u32 %s2780_s22, 7 }
  0x3a   : > { %3603 = sst [smem:[#allocation28_spill]] %s3000_s20  ;;  %s340_s6 = sadd.s32 %s2776_s21, %s2277_s7 }
  0x3b   : > { %s335_s4 = scalar_lea.vmem [#allocation4], %s2162_s3  ;;  %s2165_s29 = sshll.u32 %s340_s6, 3 }
  0x3c   : > { %s345_s2 = sshll.u32 %s335_s4, 4  ;;  %s3604_s0 = sld [smem:[#allocation29_spill]]  ;;  %s346_s2 = int_to_ptr.vmem [resolvable:$true] %s345_s2 }
  0x3d   : > { %p2365_p5 = pnand %p2377_p0, %p2984_p11  ;;  %s332_s7 = scalar_lea.sflag [#allocation5], %s331_s10 }
  0x3e   : > { %s2790_s22 = smov 256   ;;  %s2791_s3 = smov 128  }
  0x3f   : > { %s2792_s20 = smov 8   ;;  %s355_s4 = sand.u32 1, %s2784_s23  }
  0x40   : > { %s78_s6 = sadd.s32 1, %s2752_s16  ;;  %p85_p9 = scmp.ne.s32.totalorder %s2752_s16, %s2748_s15 }
  0x41   : > { %s3018_s18 = scalar_select %p76_p10, %s2752_s16, %s78_s6  }
  0x42   : > { %s342_s8 = scalar_lea.hbm %s3604_s0, %s2165_s29  ;;  %p87_p2 = por %p85_p9, %p60_p7 }
  0x43   : > { %s343_s5 = sshll.u32 %s342_s8, 4  ;;  %s357_s29 = sand.u32 1, %s2752_s16   ;;  %s344_s5 = int_to_ptr.hbm [resolvable:$true] %s343_s5 }
  0x44   : > { %2367 = dma.hbm_to_vmem [thread:$0]  (!%p2365_p5), %s344_s5, 8192, %s346_s2, %s332_s7, %s2790_s22, %s2791_s3, %s2792_s20  }
  0x45   : > { %s2166_s28 = sshll.u32 %s357_s29, 6  ;;  %s2278_s14 = sshll.u32 %s2776_s21, 6 }
  0x46   : > { %s364_s10 = scalar_lea.hbm %s3556_s1, %s2278_s14  ;;  %s359_s9 = scalar_lea.vmem [#allocation7], %s2166_s28 }
  0x47   : > { %s365_s0 = sshll.u32 %s364_s10, 4  ;;  %s367_s13 = sshll.u32 %s359_s9, 4  ;;  %s366_s0 = int_to_ptr.hbm [resolvable:$true] %s365_s0  ;;  %s368_s13 = int_to_ptr.vmem [resolvable:$true] %s367_s13 }
  0x48   : > { %p2368_p11 = pnand %p2377_p0, %p87_p2  ;;  %s356_s2 = scalar_lea.sflag [#allocation8], %s355_s4 }
  0x49   : > { %s3605_s20 = smov 4   ;;  %s3606_s22 = smov 64  }
  0x4a   : > { %2370 = dma.hbm_to_vmem [thread:$0]  (!%p2368_p11), %s366_s0, 1024, %s368_s13, %s356_s2, %s3606_s22, %s3606_s22, %s3605_s20  }
  0x4b   : > { %379 = sbr.rel (%p2948_p13) target bundleno = 1290 (0x50a), region = 56  ;;  %s381_s11 = sand.u32 (!%p2948_p13), 1, %s2760_s17  }
  0x4c   : > { %s2170_s5 = sshll.u32 (!%p2948_p13), %s381_s11, 9  ;;  %s382_s7 = scalar_lea.sflag (!%p2948_p13), [#allocation5], %s381_s11 }
  0x4d   : > { %s3035_s3 = scalar_lea.vmem (!%p2948_p13), [#allocation4], %s2170_s5 }
  0x50   : > { %2711 = dma.done.wait (%p2925_p4), %s382_s7, 8192  }
  0x51   : > { %2713 = vsyncadd (%p2925_p4), %s382_s7, 4294959104  ;;  %s391_s9 = sand.u32 1, %s2915_s24   ;;  %s393_s0 = sand.u32 1, %s2748_s15  }
  0x52   : > { %s2171_s13 = sshll.u32 %s393_s0, 6  ;;  %s392_s30 = scalar_lea.sflag [#allocation8], %s391_s9 }
  0x53   : > { %s3043_s4 = scalar_lea.vmem [#allocation7], %s2171_s13 }
  0x54   : > { %2715 = dma.done.wait (%p2932_p6), %s392_s30, 1024  }
  0x55   : > { %2717 = vsyncadd (%p2932_p6), %s392_s30, 4294966272 }
  0x56   : > { %2719 = dma.done.wait (%p66_p1), [#allocation8], 1024  }
  0x57   : > { %2721 = vsyncadd (%p66_p1), [#allocation8], 4294966272 }
  0x58   : > { %2723 = dma.done.wait (%p66_p1), [#allocation11], 1024  }
  0x59   : > { %2725 = vsyncadd (%p66_p1), [#allocation11], 4294966272  ;;  %s443_s26 = sand.u32 1, %s2736_s12   ;;  %p2175_p4 = scmp.ne.s32.totalorder %s2768_s19, 0 }
  0x5a   : > { %s3060_s6 = sshll.u32 %s443_s26, 2 }
  0x5b   : > { %s445_s27 = scalar_lea.vmem [#allocation12], %s3060_s6  ;;  %452 = sbr.rel (%p2175_p4) target bundleno = 161 (0xa1), region = 76 }
  0x60   : > { %v2793_v1 = vmov 0.0  }
  0x61   : > { %453 = vst [vmem:[#allocation2 + $0xb0] sm:$0xff] %v2793_v1 }
  0x62   : > { %454 = vst [vmem:[#allocation2 + $0x1b0] sm:$0xff] %v2793_v1 }
  0x63   : > { %455 = vst [vmem:[#allocation2 + $0xd8] sm:$0xff] %v2793_v1 }
  0x64   : > { %456 = vst [vmem:[#allocation2 + $0x18] sm:$0xff] %v2793_v1 }
  0x65   : > { %457 = vst [vmem:[#allocation2 + $0x50] sm:$0xff] %v2793_v1 }
  0x66   : > { %458 = vst [vmem:[#allocation2 + $0x168] sm:$0xff] %v2793_v1 }
  0x67   : > { %459 = vst [vmem:[#allocation2 + $0x130] sm:$0xff] %v2793_v1 }
  0x68   : > { %460 = vst [vmem:[#allocation2 + $0x48] sm:$0xff] %v2793_v1 }
  0x69   : > { %461 = vst [vmem:[#allocation2 + $0x180] sm:$0xff] %v2793_v1 }
  0x6a   : > { %462 = vst [vmem:[#allocation2 + $0x110] sm:$0xff] %v2793_v1 }
  0x6b   : > { %463 = vst [vmem:[#allocation2 + $0x118] sm:$0xff] %v2793_v1 }
  0x6c   : > { %464 = vst [vmem:[#allocation2 + $0x98] sm:$0xff] %v2793_v1 }
  0x6d   : > { %465 = vst [vmem:[#allocation2 + $0x120] sm:$0xff] %v2793_v1 }
  0x6e   : > { %466 = vst [vmem:[#allocation2 + $0x150] sm:$0xff] %v2793_v1 }
  0x6f   : > { %467 = vst [vmem:[#allocation2 + $0x108] sm:$0xff] %v2793_v1 }
  0x70   : > { %468 = vst [vmem:[#allocation2 + $0x60] sm:$0xff] %v2793_v1 }
  0x71   : > { %469 = vst [vmem:[#allocation2 + $0xe0] sm:$0xff] %v2793_v1 }
  0x72   : > { %470 = vst [vmem:[#allocation2 + $0x188] sm:$0xff] %v2793_v1 }
  0x73   : > { %471 = vst [vmem:[#allocation2 + $0x138] sm:$0xff] %v2793_v1 }
  0x74   : > { %472 = vst [vmem:[#allocation2 + $0x140] sm:$0xff] %v2793_v1 }
  0x75   : > { %473 = vst [vmem:[#allocation2 + $0x80] sm:$0xff] %v2793_v1 }
  0x76   : > { %474 = vst [vmem:[#allocation2 + $0x1a8] sm:$0xff] %v2793_v1 }
  0x77   : > { %475 = vst [vmem:[#allocation2 + $0x1b8] sm:$0xff] %v2793_v1 }
  0x78   : > { %476 = vst [vmem:[#allocation2 + $0x28] sm:$0xff] %v2793_v1 }
  0x79   : > { %477 = vst [vmem:[#allocation2 + $0x1e8] sm:$0xff] %v2793_v1 }
  0x7a   : > { %478 = vst [vmem:[#allocation2 + $0xf8] sm:$0xff] %v2793_v1 }
  0x7b   : > { %479 = vst [vmem:[#allocation2 + $0x160] sm:$0xff] %v2793_v1 }
  0x7c   : > { %480 = vst [vmem:[#allocation2 + $0x30] sm:$0xff] %v2793_v1 }
  0x7d   : > { %481 = vst [vmem:[#allocation2 + $0x1e0] sm:$0xff] %v2793_v1 }
  0x7e   : > { %482 = vst [vmem:[#allocation2] sm:$0xff] %v2793_v1 }
  0x7f   : > { %483 = vst [vmem:[#allocation2 + $0xf0] sm:$0xff] %v2793_v1 }
  0x80   : > { %484 = vst [vmem:[#allocation2 + $0x8] sm:$0xff] %v2793_v1 }
  0x81   : > { %485 = vst [vmem:[#allocation2 + $0x148] sm:$0xff] %v2793_v1 }
  0x82   : > { %486 = vst [vmem:[#allocation2 + $0x1d0] sm:$0xff] %v2793_v1 }
  0x83   : > { %487 = vst [vmem:[#allocation2 + $0x100] sm:$0xff] %v2793_v1 }
  0x84   : > { %488 = vst [vmem:[#allocation2 + $0xc8] sm:$0xff] %v2793_v1 }
  0x85   : > { %489 = vst [vmem:[#allocation2 + $0x40] sm:$0xff] %v2793_v1 }
  0x86   : > { %490 = vst [vmem:[#allocation2 + $0x1f8] sm:$0xff] %v2793_v1 }
  0x87   : > { %491 = vst [vmem:[#allocation2 + $0x20] sm:$0xff] %v2793_v1 }
  0x88   : > { %492 = vst [vmem:[#allocation2 + $0x128] sm:$0xff] %v2793_v1 }
  0x89   : > { %493 = vst [vmem:[#allocation2 + $0x1a0] sm:$0xff] %v2793_v1 }
  0x8a   : > { %494 = vst [vmem:[#allocation2 + $0x1f0] sm:$0xff] %v2793_v1 }
  0x8b   : > { %495 = vst [vmem:[#allocation2 + $0xe8] sm:$0xff] %v2793_v1 }
  0x8c   : > { %496 = vst [vmem:[#allocation2 + $0x78] sm:$0xff] %v2793_v1 }
  0x8d   : > { %497 = vst [vmem:[#allocation2 + $0x70] sm:$0xff] %v2793_v1 }
  0x8e   : > { %498 = vst [vmem:[#allocation2 + $0x90] sm:$0xff] %v2793_v1 }
  0x8f   : > { %499 = vst [vmem:[#allocation2 + $0x1d8] sm:$0xff] %v2793_v1 }
  0x90   : > { %500 = vst [vmem:[#allocation2 + $0xd0] sm:$0xff] %v2793_v1 }
  0x91   : > { %501 = vst [vmem:[#allocation2 + $0xb8] sm:$0xff] %v2793_v1 }
  0x92   : > { %502 = vst [vmem:[#allocation2 + $0x88] sm:$0xff] %v2793_v1 }
  0x93   : > { %503 = vst [vmem:[#allocation2 + $0xa8] sm:$0xff] %v2793_v1 }
  0x94   : > { %504 = vst [vmem:[#allocation2 + $0x1c8] sm:$0xff] %v2793_v1 }
  0x95   : > { %505 = vst [vmem:[#allocation2 + $0x170] sm:$0xff] %v2793_v1 }
  0x96   : > { %506 = vst [vmem:[#allocation2 + $0x178] sm:$0xff] %v2793_v1 }
  0x97   : > { %507 = vst [vmem:[#allocation2 + $0x68] sm:$0xff] %v2793_v1 }
  0x98   : > { %508 = vst [vmem:[#allocation2 + $0x190] sm:$0xff] %v2793_v1 }
  0x99   : > { %509 = vst [vmem:[#allocation2 + $0x198] sm:$0xff] %v2793_v1 }
  0x9a   : > { %510 = vst [vmem:[#allocation2 + $0x38] sm:$0xff] %v2793_v1 }
  0x9b   : > { %511 = vst [vmem:[#allocation2 + $0xc0] sm:$0xff] %v2793_v1 }
  0x9c   : > { %512 = vst [vmem:[#allocation2 + $0x1c0] sm:$0xff] %v2793_v1 }
  0x9d   : > { %513 = vst [vmem:[#allocation2 + $0x158] sm:$0xff] %v2793_v1 }
  0x9e   : > { %514 = vst [vmem:[#allocation2 + $0x10] sm:$0xff] %v2793_v1 }
  0x9f   : > { %515 = vst [vmem:[#allocation2 + $0x58] sm:$0xff] %v2793_v1 }
  0xa0   : > { %516 = vst [vmem:[#allocation2 + $0xa0] sm:$0xff] %v2793_v1 }
  0xa1 PF: > { %v2286_v2 = vld [vmem:[%s3043_s4 + $0x38] sm:$0xff]  ;;  %v2285_v3 = vld [vmem:[%s3043_s4 + $0x30] sm:$0xff]  ;;  %v2284_v4 = vld [vmem:[%s3043_s4 + $0x28] sm:$0xff]  ;;  %p2208_p1 = scmp.ne.s32.totalorder %s2768_s19, 1 }
  0xa2   : > { %741 = vmatpush.bf16.msra.mxu0 %v2286_v2  ;;  %2303 = vmatpush.bf16.msra.mxu1 %v2286_v2  ;;  %v2283_v5 = vld [vmem:[%s3043_s4 + $0x20] sm:$0xff]  ;;  %v2282_v6 = vld [vmem:[%s3043_s4 + $0x18] sm:$0xff]  ;;  %v2281_v7 = vld [vmem:[%s3043_s4 + $0x10] sm:$0xff]  ;;  %s3607_s28 = sld [smem:[#allocation30_spill]] (!%p2208_p1) }
  0xa3   : > { %2304 = vmatpush.bf16.msra.mxu2 %v2286_v2  ;;  %2305 = vmatpush.bf16.msra.mxu3 %v2286_v2  ;;  %v2280_v8 = vld [vmem:[%s3043_s4 + $0x8] sm:$0xff]  ;;  %v2279_v9 = vld [vmem:[%s3043_s4] sm:$0xff]  ;;  %v519_v22 = vld [vmem:[%s3035_s3 + $0x10] sm:$0xff]  ;;  %s3608_s25 = sld [smem:[#allocation32_spill]] (!%p2208_p1) }
  0xa4   : > { %v517_v10 = vld [vmem:[%s3035_s3] sm:$0xff]  ;;  %v518_v11 = vld [vmem:[%s3035_s3 + $0x8] sm:$0xff]  ;;  %v520_v23 = vld [vmem:[%s3035_s3 + $0x18] sm:$0xff]  ;;  %s3609_s2 = sld [smem:[#allocation34_spill]] (!%p2208_p1) }
  0xa5   : > { %v533_v12 = vld [vmem:[%s3035_s3 + $0x80] sm:$0xff]  ;;  %v534_v13 = vld [vmem:[%s3035_s3 + $0x88] sm:$0xff]  ;;  %v581_v18 = vpack.c.bf16 %v518_v11, %v517_v10  ;;  %v535_v24 = vld [vmem:[%s3035_s3 + $0x90] sm:$0xff]  ;;  %v582_v30 = vpack.c.bf16 %v520_v23, %v519_v22  ;;  %s3610_s11 = sld [smem:[#allocation35_spill]] (!%p2208_p1) }
  0xa6   : > { %742 = vmatpush.bf16.msra.mxu0 %v2285_v3  ;;  %2306 = vmatpush.bf16.msra.mxu1 %v2285_v3  ;;  %v549_v14 = vld [vmem:[%s3035_s3 + $0x100] sm:$0xff]  ;;  %v550_v15 = vld [vmem:[%s3035_s3 + $0x108] sm:$0xff]  ;;  %v589_v19 = vpack.c.bf16 %v534_v13, %v533_v12  ;;  %v536_v25 = vld [vmem:[%s3035_s3 + $0x98] sm:$0xff] }
  0xa7   : > { %2307 = vmatpush.bf16.msra.mxu2 %v2285_v3  ;;  %2308 = vmatpush.bf16.msra.mxu3 %v2285_v3  ;;  %v565_v16 = vld [vmem:[%s3035_s3 + $0x180] sm:$0xff]  ;;  %v566_v17 = vld [vmem:[%s3035_s3 + $0x188] sm:$0xff]  ;;  %v597_v20 = vpack.c.bf16 %v550_v15, %v549_v14  ;;  %v551_v26 = vld [vmem:[%s3035_s3 + $0x110] sm:$0xff]  ;;  %v590_v31 = vpack.c.bf16 %v536_v25, %v535_v24 }
  0xa8   : > { %v605_v21 = vpack.c.bf16 %v566_v17, %v565_v16  ;;  %v552_v27 = vld [vmem:[%s3035_s3 + $0x118] sm:$0xff]  ;;  %v567_v28 = vld [vmem:[%s3035_s3 + $0x190] sm:$0xff]  ;;  %v521_v34 = vld [vmem:[%s3035_s3 + $0x20] sm:$0xff] }
  0xa9   : > { %v568_v29 = vld [vmem:[%s3035_s3 + $0x198] sm:$0xff]  ;;  %v598_v32 = vpack.c.bf16 %v552_v27, %v551_v26  ;;  %v522_v35 = vld [vmem:[%s3035_s3 + $0x28] sm:$0xff]  ;;  %v537_v36 = vld [vmem:[%s3035_s3 + $0xa0] sm:$0xff] }
  0xaa   : > { %743 = vmatpush.bf16.msra.mxu0 %v2284_v4  ;;  %2309 = vmatpush.bf16.msra.mxu1 %v2284_v4  ;;  %v606_v33 = vpack.c.bf16 %v568_v29, %v567_v28  ;;  %v538_v37 = vld [vmem:[%s3035_s3 + $0xa8] sm:$0xff]  ;;  %v553_v38 = vld [vmem:[%s3035_s3 + $0x120] sm:$0xff]  ;;  %v583_v42 = vpack.c.bf16 %v522_v35, %v521_v34  ;;  %v523_v46 = vld [vmem:[%s3035_s3 + $0x30] sm:$0xff] }
  0xab   : > { %2310 = vmatpush.bf16.msra.mxu2 %v2284_v4  ;;  %2311 = vmatpush.bf16.msra.mxu3 %v2284_v4  ;;  %v554_v39 = vld [vmem:[%s3035_s3 + $0x128] sm:$0xff]  ;;  %v569_v40 = vld [vmem:[%s3035_s3 + $0x1a0] sm:$0xff]  ;;  %v591_v43 = vpack.c.bf16 %v538_v37, %v537_v36  ;;  %v524_v47 = vld [vmem:[%s3035_s3 + $0x38] sm:$0xff] }
  0xac   : > { %v570_v41 = vld [vmem:[%s3035_s3 + $0x1a8] sm:$0xff]  ;;  %v599_v44 = vpack.c.bf16 %v554_v39, %v553_v38  ;;  %v539_v48 = vld [vmem:[%s3035_s3 + $0xb0] sm:$0xff]  ;;  %v540_v49 = vld [vmem:[%s3035_s3 + $0xb8] sm:$0xff]  ;;  %v584_v54 = vpack.c.bf16 %v524_v47, %v523_v46 }
  0xad   : > { %v607_v45 = vpack.c.bf16 %v570_v41, %v569_v40  ;;  %v555_v50 = vld [vmem:[%s3035_s3 + $0x130] sm:$0xff]  ;;  %v556_v51 = vld [vmem:[%s3035_s3 + $0x138] sm:$0xff]  ;;  %v592_v55 = vpack.c.bf16 %v540_v49, %v539_v48  ;;  %v525_v58 = vld [vmem:[%s3035_s3 + $0x40] sm:$0xff] }
  0xae   : > { %744 = vmatpush.bf16.msra.mxu0 %v2283_v5  ;;  %2312 = vmatpush.bf16.msra.mxu1 %v2283_v5  ;;  %v571_v52 = vld [vmem:[%s3035_s3 + $0x1b0] sm:$0xff]  ;;  %v572_v53 = vld [vmem:[%s3035_s3 + $0x1b8] sm:$0xff]  ;;  %v600_v56 = vpack.c.bf16 %v556_v51, %v555_v50  ;;  %v526_v59 = vld [vmem:[%s3035_s3 + $0x48] sm:$0xff] }
  0xaf   : > { %2313 = vmatpush.bf16.msra.mxu2 %v2283_v5  ;;  %2314 = vmatpush.bf16.msra.mxu3 %v2283_v5  ;;  %v608_v57 = vpack.c.bf16 %v572_v53, %v571_v52  ;;  %v541_v60 = vld [vmem:[%s3035_s3 + $0xc0] sm:$0xff]  ;;  %v542_v61 = vld [vmem:[%s3035_s3 + $0xc8] sm:$0xff]  ;;  %v585_v2 = vpack.c.bf16 %v526_v59, %v525_v58  ;;  %v559_v10 = vld [vmem:[%s3035_s3 + $0x150] sm:$0xff] }
  0xb0   : > { %v557_v62 = vld [vmem:[%s3035_s3 + $0x140] sm:$0xff]  ;;  %v558_v63 = vld [vmem:[%s3035_s3 + $0x148] sm:$0xff]  ;;  %v593_v3 = vpack.c.bf16 %v542_v61, %v541_v60  ;;  %v560_v11 = vld [vmem:[%s3035_s3 + $0x158] sm:$0xff] }
  0xb1   : > { %v573_v0 = vld [vmem:[%s3035_s3 + $0x1c0] sm:$0xff]  ;;  %v574_v1 = vld [vmem:[%s3035_s3 + $0x1c8] sm:$0xff]  ;;  %v601_v4 = vpack.c.bf16 %v558_v63, %v557_v62  ;;  %v575_v12 = vld [vmem:[%s3035_s3 + $0x1d0] sm:$0xff]  ;;  %v602_v16 = vpack.c.bf16 %v560_v11, %v559_v10 }
  0xb2   : > { %745 = vmatpush.bf16.msra.mxu0 %v2282_v6  ;;  %2315 = vmatpush.bf16.msra.mxu1 %v2282_v6  ;;  %v609_v5 = vpack.c.bf16 %v574_v1, %v573_v0  ;;  %v576_v13 = vld [vmem:[%s3035_s3 + $0x1d8] sm:$0xff]  ;;  %v561_v22 = vld [vmem:[%s3035_s3 + $0x160] sm:$0xff]  ;;  %v562_v23 = vld [vmem:[%s3035_s3 + $0x168] sm:$0xff] }
  0xb3   : > { %2316 = vmatpush.bf16.msra.mxu2 %v2282_v6  ;;  %2317 = vmatpush.bf16.msra.mxu3 %v2282_v6  ;;  %v527_v6 = vld [vmem:[%s3035_s3 + $0x50] sm:$0xff]  ;;  %v610_v17 = vpack.c.bf16 %v576_v13, %v575_v12  ;;  %v577_v24 = vld [vmem:[%s3035_s3 + $0x1e0] sm:$0xff]  ;;  %v578_v25 = vld [vmem:[%s3035_s3 + $0x1e8] sm:$0xff]  ;;  %v603_v28 = vpack.c.bf16 %v562_v23, %v561_v22 }
  0xb4   : > { %v611_v29 = vpack.c.bf16 %v578_v25, %v577_v24  ;;  %v563_v34 = vld [vmem:[%s3035_s3 + $0x170] sm:$0xff]  ;;  %v564_v35 = vld [vmem:[%s3035_s3 + $0x178] sm:$0xff]  ;;  %v645_v48 = vld [vmem:[#allocation2 + $0x148] sm:$0xff] }
  0xb5   : > { %v579_v36 = vld [vmem:[%s3035_s3 + $0x1f0] sm:$0xff]  ;;  %v580_v37 = vld [vmem:[%s3035_s3 + $0x1f8] sm:$0xff]  ;;  %v604_v40 = vpack.c.bf16 %v564_v35, %v563_v34  ;;  %v630_v51 = vld [vmem:[#allocation2 + $0x188] sm:$0xff] }
  0xb6   : > { %746 = vmatpush.bf16.msra.mxu0 %v2281_v7  ;;  %2318 = vmatpush.bf16.msra.mxu1 %v2281_v7  ;;  %v612_v41 = vpack.c.bf16 %v580_v37, %v579_v36  ;;  %v661_v49 = vld [vmem:[#allocation2 + $0xb8] sm:$0xff]  ;;  %v614_v50 = vld [vmem:[#allocation2 + $0x1b0] sm:$0xff]  ;;  %v662_v61 = vld [vmem:[#allocation2 + $0x88] sm:$0xff] }
  0xb7   : > { %2319 = vmatpush.bf16.msra.mxu2 %v2281_v7  ;;  %2320 = vmatpush.bf16.msra.mxu3 %v2281_v7  ;;  %v528_v7 = vld [vmem:[%s3035_s3 + $0x58] sm:$0xff]  ;;  %v646_v60 = vld [vmem:[#allocation2 + $0x1d0] sm:$0xff]  ;;  %v618_v34 = vld [vmem:[#allocation2 + $0x168] sm:$0xff] }
  0xb8   : > { %v586_v14 = vpack.c.bf16 %v528_v7, %v527_v6  ;;  %v615_v62 = vld [vmem:[#allocation2 + $0xd8] sm:$0xff]  ;;  %v632_v11 = vld [vmem:[#allocation2 + $0x140] sm:$0xff]  ;;  %v617_v22 = vld [vmem:[#allocation2 + $0x50] sm:$0xff] }
  0xb9   : > { %v631_v63 = vld [vmem:[#allocation2 + $0x138] sm:$0xff]  ;;  %v633_v23 = vld [vmem:[#allocation2 + $0x80] sm:$0xff]  ;;  %v634_v35 = vld [vmem:[#allocation2 + $0x1a8] sm:$0xff] }
  0xba   : > { %747 = vmatpush.bf16.msra.mxu0 %v2280_v8  ;;  %2321 = vmatpush.bf16.msra.mxu1 %v2280_v8  ;;  %v616_v10 = vld [vmem:[#allocation2 + $0x18] sm:$0xff] }
  0xbb   : > { %2322 = vmatpush.bf16.msra.mxu2 %v2280_v8  ;;  %2323 = vmatpush.bf16.msra.mxu3 %v2280_v8  ;;  %v543_v8 = vld [vmem:[%s3035_s3 + $0xd0] sm:$0xff] }
  0xbe   : > { %748 = vmatpush.bf16.msra.mxu0 %v2279_v9  ;;  %2324 = vmatpush.bf16.msra.mxu1 %v2279_v9 }
  0xbf   : > { %2325 = vmatpush.bf16.msra.mxu2 %v2279_v9  ;;  %2326 = vmatpush.bf16.msra.mxu3 %v2279_v9  ;;  %v544_v9 = vld [vmem:[%s3035_s3 + $0xd8] sm:$0xff] }
  0xc0   : > { %v594_v15 = vpack.c.bf16 %v544_v9, %v543_v8  ;;  %v647_v8 = vld [vmem:[#allocation2 + $0x100] sm:$0xff]  ;;  %v663_v9 = vld [vmem:[#allocation2 + $0xa8] sm:$0xff] }
  0xc1   : > { %749 = vmatmul.bf16.vlgmr.msra.gmra.mxu0 %v581_v18  ;;  %789 = vmatmul.bf16.vlgmr.msra.gmra.mxu1 %v589_v19  ;;  %v529_v18 = vld [vmem:[%s3035_s3 + $0x60] sm:$0xff]  ;;  %v530_v19 = vld [vmem:[%s3035_s3 + $0x68] sm:$0xff] }
  0xc2   : > { %829 = vmatmul.bf16.vlgmr.msra.gmra.mxu2 %v597_v20  ;;  %869 = vmatmul.bf16.vlgmr.msra.gmra.mxu3 %v605_v21  ;;  %v545_v20 = vld [vmem:[%s3035_s3 + $0xe0] sm:$0xff]  ;;  %v546_v21 = vld [vmem:[%s3035_s3 + $0xe8] sm:$0xff]  ;;  %v587_v26 = vpack.c.bf16 %v530_v19, %v529_v18 }
  0xc3   : > { %v595_v27 = vpack.c.bf16 %v546_v21, %v545_v20  ;;  %v648_v20 = vld [vmem:[#allocation2 + $0xc8] sm:$0xff] }
  0xc4   : > { %v664_v21 = vld [vmem:[#allocation2 + $0x1c8] sm:$0xff] }
  0xd1   : > { %754 = vmatmul.bf16.gmra.mxu0 %v582_v30  ;;  %794 = vmatmul.bf16.gmra.mxu1 %v590_v31  ;;  %v531_v30 = vld [vmem:[%s3035_s3 + $0x70] sm:$0xff]  ;;  %v532_v31 = vld [vmem:[%s3035_s3 + $0x78] sm:$0xff] }
  0xd2   : > { %834 = vmatmul.bf16.gmra.mxu2 %v598_v32  ;;  %874 = vmatmul.bf16.gmra.mxu3 %v606_v33  ;;  %v547_v32 = vld [vmem:[%s3035_s3 + $0xf0] sm:$0xff]  ;;  %v548_v33 = vld [vmem:[%s3035_s3 + $0xf8] sm:$0xff]  ;;  %v588_v38 = vpack.c.bf16 %v532_v31, %v531_v30 }
  0xd3   : > { %v596_v39 = vpack.c.bf16 %v548_v33, %v547_v32  ;;  %v649_v32 = vld [vmem:[#allocation2 + $0x40] sm:$0xff]  ;;  %v665_v33 = vld [vmem:[#allocation2 + $0x170] sm:$0xff] }
  0xe1   : > { %759 = vmatmul.bf16.gmra.mxu0 %v583_v42  ;;  %799 = vmatmul.bf16.gmra.mxu1 %v591_v43  ;;  %v613_v42 = vld [vmem:[#allocation2 + $0xb0] sm:$0xff]  ;;  %v629_v43 = vld [vmem:[#allocation2 + $0xe0] sm:$0xff] }
  0xe2   : > { %839 = vmatmul.bf16.gmra.mxu2 %v599_v44  ;;  %879 = vmatmul.bf16.gmra.mxu3 %v607_v45 }
  0xf1   : > { %764 = vmatmul.bf16.gmra.mxu0 %v584_v54  ;;  %804 = vmatmul.bf16.gmra.mxu1 %v592_v55 }
  0xf2   : > { %844 = vmatmul.bf16.gmra.mxu2 %v600_v56  ;;  %884 = vmatmul.bf16.gmra.mxu3 %v608_v57 }
 0x101   : > { %769 = vmatmul.bf16.gmra.mxu0 %v585_v2  ;;  %809 = vmatmul.bf16.gmra.mxu1 %v593_v3 }
 0x102   : > { %849 = vmatmul.bf16.gmra.mxu2 %v601_v4  ;;  %889 = vmatmul.bf16.gmra.mxu3 %v609_v5 }
 0x111   : > { %774 = vmatmul.bf16.gmra.mxu0 %v586_v14  ;;  %814 = vmatmul.bf16.gmra.mxu1 %v594_v15 }
 0x112   : > { %854 = vmatmul.bf16.gmra.mxu2 %v602_v16  ;;  %894 = vmatmul.bf16.gmra.mxu3 %v610_v17 }
 0x121   : > { %779 = vmatmul.bf16.gmra.mxu0 %v587_v26  ;;  %819 = vmatmul.bf16.gmra.mxu1 %v595_v27 }
 0x122   : > { %859 = vmatmul.bf16.gmra.mxu2 %v603_v28  ;;  %899 = vmatmul.bf16.gmra.mxu3 %v611_v29 }
 0x131   : > { %784 = vmatmul.bf16.gmra.mxu0 %v588_v38  ;;  %824 = vmatmul.bf16.gmra.mxu1 %v596_v39 }
 0x132   : > { %864 = vmatmul.bf16.gmra.mxu2 %v604_v40  ;;  %904 = vmatmul.bf16.gmra.mxu3 %v612_v41 }
 0x13e   : > { %v750_v44 = vpop.f32.mrf.mxu0  ;;  %v790_v45 = vpop.f32.mrf.mxu1 }
 0x13f   : > { %v910_v46 = vadd.f32 %v750_v44, %v613_v42  ;;  %v926_v47 = vadd.f32 %v790_v45, %v629_v43  ;;  %v650_v44 = vld [vmem:[#allocation2 + $0x1f8] sm:$0xff] }
 0x140   : > { %v666_v45 = vld [vmem:[#allocation2 + $0x178] sm:$0xff] }
 0x141   : > { %974 = vst [vmem:[#allocation2 + $0xb0] sm:$0xff] %v910_v46  ;;  %v619_v46 = vld [vmem:[#allocation2 + $0x130] sm:$0xff] }
 0x142   : > { %990 = vst [vmem:[#allocation2 + $0xe0] sm:$0xff] %v926_v47  ;;  %v635_v47 = vld [vmem:[#allocation2 + $0x1b8] sm:$0xff] }
 0x145   : > { %v830_v52 = vpop.f32.mrf.mxu2  ;;  %v870_v53 = vpop.f32.mrf.mxu3 }
 0x146   : > { %v942_v54 = vadd.f32 %v830_v52, %v645_v48  ;;  %v958_v55 = vadd.f32 %v870_v53, %v661_v49  ;;  %v752_v56 = vpop.f32.mrf.mxu0  ;;  %v792_v57 = vpop.f32.mrf.mxu1 }
 0x147   : > { %v911_v58 = vadd.f32 %v752_v56, %v614_v50  ;;  %v927_v59 = vadd.f32 %v792_v57, %v630_v51  ;;  %v651_v56 = vld [vmem:[#allocation2 + $0x20] sm:$0xff]  ;;  %v667_v57 = vld [vmem:[#allocation2 + $0x68] sm:$0xff] }
 0x148   : > { %1006 = vst [vmem:[#allocation2 + $0x148] sm:$0xff] %v942_v54 }
 0x149   : > { %1022 = vst [vmem:[#allocation2 + $0xb8] sm:$0xff] %v958_v55 }
 0x14a   : > { %975 = vst [vmem:[#allocation2 + $0x1b0] sm:$0xff] %v911_v58  ;;  %v620_v58 = vld [vmem:[#allocation2 + $0x48] sm:$0xff] }
 0x14b   : > { %991 = vst [vmem:[#allocation2 + $0x188] sm:$0xff] %v927_v59  ;;  %v636_v59 = vld [vmem:[#allocation2 + $0x28] sm:$0xff] }
 0x14d   : > { %v832_v0 = vpop.f32.mrf.mxu2  ;;  %v872_v1 = vpop.f32.mrf.mxu3 }
 0x14e   : > { %v943_v2 = vadd.f32 %v832_v0, %v646_v60  ;;  %v959_v3 = vadd.f32 %v872_v1, %v662_v61  ;;  %v755_v4 = vpop.f32.mrf.mxu0  ;;  %v795_v5 = vpop.f32.mrf.mxu1 }
 0x14f   : > { %v912_v6 = vadd.f32 %v755_v4, %v615_v62  ;;  %v928_v7 = vadd.f32 %v795_v5, %v631_v63  ;;  %v652_v4 = vld [vmem:[#allocation2 + $0x128] sm:$0xff]  ;;  %v668_v5 = vld [vmem:[#allocation2 + $0x190] sm:$0xff] }
 0x150   : > { %1007 = vst [vmem:[#allocation2 + $0x1d0] sm:$0xff] %v943_v2 }
 0x151   : > { %1023 = vst [vmem:[#allocation2 + $0x88] sm:$0xff] %v959_v3 }
 0x152   : > { %976 = vst [vmem:[#allocation2 + $0xd8] sm:$0xff] %v912_v6  ;;  %v621_v6 = vld [vmem:[#allocation2 + $0x180] sm:$0xff] }
 0x153   : > { %992 = vst [vmem:[#allocation2 + $0x138] sm:$0xff] %v928_v7  ;;  %v637_v7 = vld [vmem:[#allocation2 + $0x1e8] sm:$0xff] }
 0x155   : > { %v835_v12 = vpop.f32.mrf.mxu2  ;;  %v875_v13 = vpop.f32.mrf.mxu3 }
 0x156   : > { %v944_v14 = vadd.f32 %v835_v12, %v647_v8  ;;  %v960_v15 = vadd.f32 %v875_v13, %v663_v9  ;;  %v757_v16 = vpop.f32.mrf.mxu0  ;;  %v797_v17 = vpop.f32.mrf.mxu1 }
 0x157   : > { %v913_v18 = vadd.f32 %v757_v16, %v616_v10  ;;  %v929_v19 = vadd.f32 %v797_v17, %v632_v11  ;;  %v653_v16 = vld [vmem:[#allocation2 + $0x1a0] sm:$0xff]  ;;  %v669_v17 = vld [vmem:[#allocation2 + $0x198] sm:$0xff] }
 0x158   : > { %1008 = vst [vmem:[#allocation2 + $0x100] sm:$0xff] %v944_v14 }
 0x159   : > { %1024 = vst [vmem:[#allocation2 + $0xa8] sm:$0xff] %v960_v15 }
 0x15a   : > { %977 = vst [vmem:[#allocation2 + $0x18] sm:$0xff] %v913_v18  ;;  %v622_v18 = vld [vmem:[#allocation2 + $0x110] sm:$0xff] }
 0x15b   : > { %993 = vst [vmem:[#allocation2 + $0x140] sm:$0xff] %v929_v19  ;;  %v638_v19 = vld [vmem:[#allocation2 + $0xf8] sm:$0xff] }
 0x15d   : > { %v837_v24 = vpop.f32.mrf.mxu2  ;;  %v877_v25 = vpop.f32.mrf.mxu3 }
 0x15e   : > { %v945_v26 = vadd.f32 %v837_v24, %v648_v20  ;;  %v961_v27 = vadd.f32 %v877_v25, %v664_v21  ;;  %v760_v28 = vpop.f32.mrf.mxu0  ;;  %v800_v29 = vpop.f32.mrf.mxu1 }
 0x15f   : > { %v914_v30 = vadd.f32 %v760_v28, %v617_v22  ;;  %v930_v31 = vadd.f32 %v800_v29, %v633_v23  ;;  %v654_v28 = vld [vmem:[#allocation2 + $0x1f0] sm:$0xff]  ;;  %v670_v29 = vld [vmem:[#allocation2 + $0x38] sm:$0xff] }
 0x160   : > { %1009 = vst [vmem:[#allocation2 + $0xc8] sm:$0xff] %v945_v26 }
 0x161   : > { %1025 = vst [vmem:[#allocation2 + $0x1c8] sm:$0xff] %v961_v27 }
 0x162   : > { %978 = vst [vmem:[#allocation2 + $0x50] sm:$0xff] %v914_v30  ;;  %v623_v30 = vld [vmem:[#allocation2 + $0x118] sm:$0xff] }
 0x163   : > { %994 = vst [vmem:[#allocation2 + $0x80] sm:$0xff] %v930_v31  ;;  %v639_v31 = vld [vmem:[#allocation2 + $0x160] sm:$0xff] }
 0x165   : > { %v840_v36 = vpop.f32.mrf.mxu2  ;;  %v880_v37 = vpop.f32.mrf.mxu3 }
 0x166   : > { %v946_v38 = vadd.f32 %v840_v36, %v649_v32  ;;  %v962_v39 = vadd.f32 %v880_v37, %v665_v33  ;;  %v762_v40 = vpop.f32.mrf.mxu0  ;;  %v802_v41 = vpop.f32.mrf.mxu1 }
 0x167   : > { %v915_v42 = vadd.f32 %v762_v40, %v618_v34  ;;  %v931_v43 = vadd.f32 %v802_v41, %v634_v35  ;;  %v655_v40 = vld [vmem:[#allocation2 + $0xe8] sm:$0xff]  ;;  %v671_v41 = vld [vmem:[#allocation2 + $0xc0] sm:$0xff] }
 0x168   : > { %1010 = vst [vmem:[#allocation2 + $0x40] sm:$0xff] %v946_v38 }
 0x169   : > { %1026 = vst [vmem:[#allocation2 + $0x170] sm:$0xff] %v962_v39 }
 0x16a   : > { %979 = vst [vmem:[#allocation2 + $0x168] sm:$0xff] %v915_v42  ;;  %v624_v42 = vld [vmem:[#allocation2 + $0x98] sm:$0xff] }
 0x16b   : > { %995 = vst [vmem:[#allocation2 + $0x1a8] sm:$0xff] %v931_v43  ;;  %v640_v43 = vld [vmem:[#allocation2 + $0x30] sm:$0xff] }
 0x16d   : > { %v842_v48 = vpop.f32.mrf.mxu2  ;;  %v882_v49 = vpop.f32.mrf.mxu3 }
 0x16e   : > { %v947_v50 = vadd.f32 %v842_v48, %v650_v44  ;;  %v963_v51 = vadd.f32 %v882_v49, %v666_v45  ;;  %v765_v52 = vpop.f32.mrf.mxu0  ;;  %v805_v53 = vpop.f32.mrf.mxu1 }
 0x16f   : > { %v916_v54 = vadd.f32 %v765_v52, %v619_v46  ;;  %v932_v55 = vadd.f32 %v805_v53, %v635_v47  ;;  %v656_v52 = vld [vmem:[#allocation2 + $0x78] sm:$0xff]  ;;  %v672_v53 = vld [vmem:[#allocation2 + $0x1c0] sm:$0xff] }
 0x170   : > { %1011 = vst [vmem:[#allocation2 + $0x1f8] sm:$0xff] %v947_v50 }
 0x171   : > { %1027 = vst [vmem:[#allocation2 + $0x178] sm:$0xff] %v963_v51 }
 0x172   : > { %980 = vst [vmem:[#allocation2 + $0x130] sm:$0xff] %v916_v54  ;;  %v625_v54 = vld [vmem:[#allocation2 + $0x120] sm:$0xff] }
 0x173   : > { %996 = vst [vmem:[#allocation2 + $0x1b8] sm:$0xff] %v932_v55  ;;  %v641_v55 = vld [vmem:[#allocation2 + $0x1e0] sm:$0xff] }
 0x175   : > { %v845_v60 = vpop.f32.mrf.mxu2  ;;  %v885_v61 = vpop.f32.mrf.mxu3 }
 0x176   : > { %v948_v62 = vadd.f32 %v845_v60, %v651_v56  ;;  %v964_v63 = vadd.f32 %v885_v61, %v667_v57  ;;  %v767_v0 = vpop.f32.mrf.mxu0  ;;  %v807_v1 = vpop.f32.mrf.mxu1 }
 0x177   : > { %v917_v2 = vadd.f32 %v767_v0, %v620_v58  ;;  %v933_v3 = vadd.f32 %v807_v1, %v636_v59  ;;  %v657_v0 = vld [vmem:[#allocation2 + $0x70] sm:$0xff]  ;;  %v673_v1 = vld [vmem:[#allocation2 + $0x158] sm:$0xff] }
 0x178   : > { %1012 = vst [vmem:[#allocation2 + $0x20] sm:$0xff] %v948_v62 }
 0x179   : > { %1028 = vst [vmem:[#allocation2 + $0x68] sm:$0xff] %v964_v63 }
 0x17a   : > { %981 = vst [vmem:[#allocation2 + $0x48] sm:$0xff] %v917_v2  ;;  %v626_v2 = vld [vmem:[#allocation2 + $0x150] sm:$0xff] }
 0x17b   : > { %997 = vst [vmem:[#allocation2 + $0x28] sm:$0xff] %v933_v3  ;;  %v642_v3 = vld [vmem:[#allocation2] sm:$0xff] }
 0x17d   : > { %v847_v8 = vpop.f32.mrf.mxu2  ;;  %v887_v9 = vpop.f32.mrf.mxu3 }
 0x17e   : > { %v949_v10 = vadd.f32 %v847_v8, %v652_v4  ;;  %v965_v11 = vadd.f32 %v887_v9, %v668_v5  ;;  %v770_v12 = vpop.f32.mrf.mxu0  ;;  %v810_v13 = vpop.f32.mrf.mxu1 }
 0x17f   : > { %v918_v14 = vadd.f32 %v770_v12, %v621_v6  ;;  %v934_v15 = vadd.f32 %v810_v13, %v637_v7  ;;  %v658_v12 = vld [vmem:[#allocation2 + $0x90] sm:$0xff] }
 0x180   : > { %1013 = vst [vmem:[#allocation2 + $0x128] sm:$0xff] %v949_v10  ;;  %v674_v13 = vld [vmem:[#allocation2 + $0x10] sm:$0xff] }
 0x181   : > { %1029 = vst [vmem:[#allocation2 + $0x190] sm:$0xff] %v965_v11 }
 0x182   : > { %982 = vst [vmem:[#allocation2 + $0x180] sm:$0xff] %v918_v14  ;;  %v627_v14 = vld [vmem:[#allocation2 + $0x108] sm:$0xff] }
 0x183   : > { %998 = vst [vmem:[#allocation2 + $0x1e8] sm:$0xff] %v934_v15  ;;  %v643_v15 = vld [vmem:[#allocation2 + $0xf0] sm:$0xff] }
 0x185   : > { %v850_v20 = vpop.f32.mrf.mxu2  ;;  %v890_v21 = vpop.f32.mrf.mxu3 }
 0x186   : > { %v950_v22 = vadd.f32 %v850_v20, %v653_v16  ;;  %v966_v23 = vadd.f32 %v890_v21, %v669_v17  ;;  %v772_v24 = vpop.f32.mrf.mxu0  ;;  %v812_v25 = vpop.f32.mrf.mxu1 }
 0x187   : > { %v919_v26 = vadd.f32 %v772_v24, %v622_v18  ;;  %v935_v27 = vadd.f32 %v812_v25, %v638_v19  ;;  %v659_v24 = vld [vmem:[#allocation2 + $0x1d8] sm:$0xff] }
 0x188   : > { %1014 = vst [vmem:[#allocation2 + $0x1a0] sm:$0xff] %v950_v22  ;;  %v675_v25 = vld [vmem:[#allocation2 + $0x58] sm:$0xff] }
 0x189   : > { %1030 = vst [vmem:[#allocation2 + $0x198] sm:$0xff] %v966_v23 }
 0x18a   : > { %983 = vst [vmem:[#allocation2 + $0x110] sm:$0xff] %v919_v26  ;;  %v628_v26 = vld [vmem:[#allocation2 + $0x60] sm:$0xff] }
 0x18b   : > { %999 = vst [vmem:[#allocation2 + $0xf8] sm:$0xff] %v935_v27  ;;  %v644_v27 = vld [vmem:[#allocation2 + $0x8] sm:$0xff] }
 0x18d   : > { %v852_v32 = vpop.f32.mrf.mxu2  ;;  %v892_v33 = vpop.f32.mrf.mxu3 }
 0x18e   : > { %v951_v34 = vadd.f32 %v852_v32, %v654_v28  ;;  %v967_v35 = vadd.f32 %v892_v33, %v670_v29  ;;  %v775_v36 = vpop.f32.mrf.mxu0  ;;  %v815_v37 = vpop.f32.mrf.mxu1 }
 0x18f   : > { %v920_v38 = vadd.f32 %v775_v36, %v623_v30  ;;  %v936_v39 = vadd.f32 %v815_v37, %v639_v31  ;;  %v660_v36 = vld [vmem:[#allocation2 + $0xd0] sm:$0xff]  ;;  %v676_v37 = vld [vmem:[#allocation2 + $0xa0] sm:$0xff] }
 0x190   : > { %1015 = vst [vmem:[#allocation2 + $0x1f0] sm:$0xff] %v951_v34 }
 0x191   : > { %1031 = vst [vmem:[#allocation2 + $0x38] sm:$0xff] %v967_v35 }
 0x192   : > { %984 = vst [vmem:[#allocation2 + $0x118] sm:$0xff] %v920_v38 }
 0x193   : > { %1000 = vst [vmem:[#allocation2 + $0x160] sm:$0xff] %v936_v39 }
 0x195   : > { %v855_v44 = vpop.f32.mrf.mxu2  ;;  %v895_v45 = vpop.f32.mrf.mxu3 }
 0x196   : > { %v952_v46 = vadd.f32 %v855_v44, %v655_v40  ;;  %v968_v47 = vadd.f32 %v895_v45, %v671_v41  ;;  %v777_v48 = vpop.f32.mrf.mxu0  ;;  %v817_v49 = vpop.f32.mrf.mxu1 }
 0x197   : > { %v921_v50 = vadd.f32 %v777_v48, %v624_v42  ;;  %v937_v51 = vadd.f32 %v817_v49, %v640_v43 }
 0x198   : > { %1016 = vst [vmem:[#allocation2 + $0xe8] sm:$0xff] %v952_v46 }
 0x199   : > { %1032 = vst [vmem:[#allocation2 + $0xc0] sm:$0xff] %v968_v47 }
 0x19a   : > { %985 = vst [vmem:[#allocation2 + $0x98] sm:$0xff] %v921_v50 }
 0x19b   : > { %1001 = vst [vmem:[#allocation2 + $0x30] sm:$0xff] %v937_v51 }
 0x19d   : > { %v857_v56 = vpop.f32.mrf.mxu2  ;;  %v897_v57 = vpop.f32.mrf.mxu3 }
 0x19e   : > { %v953_v58 = vadd.f32 %v857_v56, %v656_v52  ;;  %v969_v59 = vadd.f32 %v897_v57, %v672_v53  ;;  %v780_v60 = vpop.f32.mrf.mxu0  ;;  %v820_v61 = vpop.f32.mrf.mxu1 }
 0x19f   : > { %v922_v62 = vadd.f32 %v780_v60, %v625_v54  ;;  %v938_v63 = vadd.f32 %v820_v61, %v641_v55 }
 0x1a0   : > { %1017 = vst [vmem:[#allocation2 + $0x78] sm:$0xff] %v953_v58 }
 0x1a1   : > { %1033 = vst [vmem:[#allocation2 + $0x1c0] sm:$0xff] %v969_v59 }
 0x1a2   : > { %986 = vst [vmem:[#allocation2 + $0x120] sm:$0xff] %v922_v62 }
 0x1a3   : > { %1002 = vst [vmem:[#allocation2 + $0x1e0] sm:$0xff] %v938_v63 }
 0x1a5   : > { %v860_v4 = vpop.f32.mrf.mxu2  ;;  %v900_v5 = vpop.f32.mrf.mxu3 }
 0x1a6   : > { %v954_v6 = vadd.f32 %v860_v4, %v657_v0  ;;  %v970_v7 = vadd.f32 %v900_v5, %v673_v1  ;;  %v782_v8 = vpop.f32.mrf.mxu0  ;;  %v822_v9 = vpop.f32.mrf.mxu1 }
 0x1a7   : > { %v923_v10 = vadd.f32 %v782_v8, %v626_v2  ;;  %v939_v11 = vadd.f32 %v822_v9, %v642_v3 }
 0x1a8   : > { %1018 = vst [vmem:[#allocation2 + $0x70] sm:$0xff] %v954_v6 }
 0x1a9   : > { %1034 = vst [vmem:[#allocation2 + $0x158] sm:$0xff] %v970_v7 }
 0x1aa   : > { %987 = vst [vmem:[#allocation2 + $0x150] sm:$0xff] %v923_v10 }
 0x1ab   : > { %1003 = vst [vmem:[#allocation2] sm:$0xff] %v939_v11 }
 0x1ad   : > { %v862_v16 = vpop.f32.mrf.mxu2  ;;  %v902_v17 = vpop.f32.mrf.mxu3 }
 0x1ae   : > { %v955_v18 = vadd.f32 %v862_v16, %v658_v12  ;;  %v971_v19 = vadd.f32 %v902_v17, %v674_v13  ;;  %v785_v20 = vpop.f32.mrf.mxu0  ;;  %v825_v21 = vpop.f32.mrf.mxu1 }
 0x1af   : > { %v924_v22 = vadd.f32 %v785_v20, %v627_v14  ;;  %v940_v23 = vadd.f32 %v825_v21, %v643_v15 }
 0x1b0   : > { %1019 = vst [vmem:[#allocation2 + $0x90] sm:$0xff] %v955_v18 }
 0x1b1   : > { %1035 = vst [vmem:[#allocation2 + $0x10] sm:$0xff] %v971_v19 }
 0x1b2   : > { %988 = vst [vmem:[#allocation2 + $0x108] sm:$0xff] %v924_v22 }
 0x1b3   : > { %1004 = vst [vmem:[#allocation2 + $0xf0] sm:$0xff] %v940_v23 }
 0x1b5   : > { %v865_v28 = vpop.f32.mrf.mxu2  ;;  %v905_v29 = vpop.f32.mrf.mxu3 }
 0x1b6   : > { %v956_v30 = vadd.f32 %v865_v28, %v659_v24  ;;  %v972_v31 = vadd.f32 %v905_v29, %v675_v25  ;;  %v787_v32 = vpop.f32.mrf.mxu0  ;;  %v827_v33 = vpop.f32.mrf.mxu1 }
 0x1b7   : > { %v925_v34 = vadd.f32 %v787_v32, %v628_v26  ;;  %v941_v35 = vadd.f32 %v827_v33, %v644_v27 }
 0x1b8   : > { %1020 = vst [vmem:[#allocation2 + $0x1d8] sm:$0xff] %v956_v30 }
 0x1b9   : > { %1036 = vst [vmem:[#allocation2 + $0x58] sm:$0xff] %v972_v31 }
 0x1ba   : > { %989 = vst [vmem:[#allocation2 + $0x60] sm:$0xff] %v925_v34 }
 0x1bb   : > { %1005 = vst [vmem:[#allocation2 + $0x8] sm:$0xff] %v941_v35 }
 0x1bd   : > { %v867_v38 = vpop.f32.mrf.mxu2  ;;  %v907_v39 = vpop.f32.mrf.mxu3  ;;  %1041 = sbr.rel (%p2208_p1) target bundleno = 1269 (0x4f5), region = 80 }
 0x1be   : > { %v957_v40 = vadd.f32 %v867_v38, %v660_v36  ;;  %v973_v41 = vadd.f32 %v907_v39, %v676_v37 }
 0x1c0   : > { %1021 = vst [vmem:[#allocation2 + $0xd0] sm:$0xff] %v957_v40 }
 0x1c1   : > { %1037 = vst [vmem:[#allocation2 + $0xa0] sm:$0xff] %v973_v41 }
 0x1c2   : > { %v2294_v42 = vld [vmem:[#allocation9 + $0x38] sm:$0xff]  ;;  %v2293_v43 = vld [vmem:[#allocation9 + $0x30] sm:$0xff]  ;;  %v2292_v44 = vld [vmem:[#allocation9 + $0x28] sm:$0xff]  ;;  %vm2003_vm0 = vcmask 1040384   ;;  %vm2005_vm1 = vcmask 1042434   ;;  %vm2007_vm2 = vcmask 1041408  }
 0x1c3   : > { %1338 = vmatpush.bf16.msra.mxu0 %v2294_v42  ;;  %2327 = vmatpush.bf16.msra.mxu2 %v2294_v42  ;;  %v2291_v45 = vld [vmem:[#allocation9 + $0x20] sm:$0xff]  ;;  %v2290_v46 = vld [vmem:[#allocation9 + $0x18] sm:$0xff]  ;;  %v2289_v48 = vld [vmem:[#allocation9 + $0x10] sm:$0xff] }
 0x1c4   : > { %v3204_v47 = vld [vmem:[%s3607_s28] ss:$0 sm:$0xff]  ;;  %v1042_v49 = vld [vmem:[#allocation2 + $0xb0] sm:$0xff]  ;;  %v2287_v56 = vld [vmem:[#allocation9] sm:$0xff] }
 0x1c5   : > { %v1043_v50 = vld [vmem:[#allocation2 + $0x1b0] sm:$0xff]  ;;  %v1110_v51 = vadd.f32 %v3204_v47, %v1042_v49  ;;  %v1044_v58 = vld [vmem:[#allocation2 + $0xd8] sm:$0xff]  ;;  %v1047_v2 = vld [vmem:[#allocation2 + $0x168] sm:$0xff] }
 0x1c6   : > { %v1111_v52 = vadd.f32 %v3204_v47, %v1043_v50  ;;  %v2288_v53 = vld [vmem:[#allocation9 + $0x8] sm:$0xff]  ;;  %v1045_v59 = vld [vmem:[#allocation2 + $0x18] sm:$0xff]  ;;  %v1112_v60 = vadd.f32 %v3204_v47, %v1044_v58  ;;  %v1115_v4 = vadd.f32 %v3204_v47, %v1047_v2  ;;  %v1080_v12 = vld [vmem:[#allocation2 + $0x20] sm:$0xff] }
 0x1c7   : > { %1339 = vmatpush.bf16.msra.mxu0 %v2293_v43  ;;  %2328 = vmatpush.bf16.msra.mxu2 %v2293_v43  ;;  %v1174_v54 = vmax.f32 %v1110_v51, 0.0  ;;  %v1113_v61 = vadd.f32 %v3204_v47, %v1045_v59  ;;  %v1046_v1 = vld [vmem:[#allocation2 + $0x50] sm:$0xff]  ;;  %v1049_v9 = vld [vmem:[#allocation2 + $0x48] sm:$0xff]  ;;  %v1148_v14 = vadd.f32 %v3204_v47, %v1080_v12  ;;  %v1050_v22 = vld [vmem:[#allocation2 + $0x180] sm:$0xff] }
 0x1c8   : > { %v1175_v55 = vmax.f32 %v1111_v52, 0.0  ;;  %v1176_v62 = vmax.f32 %v1112_v60, 0.0  ;;  %v1114_v3 = vadd.f32 %v3204_v47, %v1046_v1  ;;  %v1179_v6 = vmax.f32 %v1115_v4, 0.0  ;;  %v1048_v8 = vld [vmem:[#allocation2 + $0x130] sm:$0xff]  ;;  %v1081_v13 = vld [vmem:[#allocation2 + $0x128] sm:$0xff]  ;;  %v1082_v26 = vld [vmem:[#allocation2 + $0x1a0] sm:$0xff] }
 0x1c9   : > { %v1177_v63 = vmax.f32 %v1113_v61, 0.0  ;;  %v1116_v10 = vadd.f32 %v3204_v47, %v1048_v8  ;;  %v1117_v11 = vadd.f32 %v3204_v47, %v1049_v9  ;;  %v1149_v15 = vadd.f32 %v3204_v47, %v1081_v13  ;;  %v1051_v23 = vld [vmem:[#allocation2 + $0x110] sm:$0xff]  ;;  %v2302_v36 = vld [vmem:[#allocation10 + $0x38] sm:$0xff]  ;;  %v1084_v41 = vld [vmem:[#allocation2 + $0xe8] sm:$0xff] }
 0x1ca   : > { %v1238_v57 = vpack.c.bf16 %v1175_v55, %v1174_v54  ;;  %v1178_v5 = vmax.f32 %v1114_v3, 0.0  ;;  %v1212_v18 = vmax.f32 %v1148_v14, 0.0  ;;  %v1118_v24 = vadd.f32 %v3204_v47, %v1050_v22  ;;  %v1083_v27 = vld [vmem:[#allocation2 + $0x1f0] sm:$0xff]  ;;  %v1052_v37 = vld [vmem:[#allocation2 + $0x118] sm:$0xff]  ;;  %1671 = vmatpush.bf16.msra.mxu1 %v2302_v36  ;;  %2335 = vmatpush.bf16.msra.mxu3 %v2302_v36  ;;  %v2299_v58 = vld [vmem:[#allocation10 + $0x20] sm:$0xff] }
 0x1cb   : > { %1340 = vmatpush.bf16.msra.mxu0 %v2292_v44  ;;  %2329 = vmatpush.bf16.msra.mxu2 %v2292_v44  ;;  %v1239_v0 = vpack.c.bf16 %v1177_v63, %v1176_v62  ;;  %v1180_v16 = vmax.f32 %v1116_v10, 0.0  ;;  %v1181_v17 = vmax.f32 %v1117_v11, 0.0  ;;  %v1213_v19 = vmax.f32 %v1149_v15, 0.0  ;;  %v1053_v38 = vld [vmem:[#allocation2 + $0x98] sm:$0xff]  ;;  %v1055_v54 = vld [vmem:[#allocation2 + $0x150] sm:$0xff]  ;;  %v1057_v8 = vld [vmem:[#allocation2 + $0x60] sm:$0xff] }
 0x1cc   : > { %v1240_v7 = vpack.c.bf16 %v1179_v6, %v1178_v5  ;;  %v1119_v25 = vadd.f32 %v3204_v47, %v1051_v23  ;;  %v1150_v28 = vadd.f32 %v3204_v47, %v1082_v26  ;;  %v1151_v29 = vadd.f32 %v3204_v47, %v1083_v27  ;;  %v1085_v42 = vld [vmem:[#allocation2 + $0x78] sm:$0xff]  ;;  %v2300_v55 = vld [vmem:[#allocation10 + $0x28] sm:$0xff]  ;;  %v2295_v14 = vld [vmem:[#allocation10] sm:$0xff] }
 0x1cd   : > { %v1257_v20 = vpack.c.bf16 %v1213_v19, %v1212_v18  ;;  %v1241_v21 = vpack.c.bf16 %v1181_v17, %v1180_v16  ;;  %v1182_v30 = vmax.f32 %v1118_v24, 0.0  ;;  %v1120_v39 = vadd.f32 %v3204_v47, %v1052_v37  ;;  %v2301_v52 = vld [vmem:[#allocation10 + $0x30] sm:$0xff]  ;;  %v2298_v3 = vld [vmem:[#allocation10 + $0x18] sm:$0xff]  ;;  %v2296_v9 = vld [vmem:[#allocation10 + $0x8] sm:$0xff] }
 0x1ce   : > { %v1183_v31 = vmax.f32 %v1119_v25, 0.0  ;;  %v1214_v32 = vmax.f32 %v1150_v28, 0.0  ;;  %v1215_v33 = vmax.f32 %v1151_v29, 0.0  ;;  %v1121_v40 = vadd.f32 %v3204_v47, %v1053_v38  ;;  %1672 = vmatpush.bf16.msra.mxu1 %v2301_v52  ;;  %2336 = vmatpush.bf16.msra.mxu3 %v2301_v52  ;;  %v1086_v59 = vld [vmem:[#allocation2 + $0x70] sm:$0xff]  ;;  %v1088_v12 = vld [vmem:[#allocation2 + $0x1d8] sm:$0xff]  ;;  %v1058_v23 = vld [vmem:[#allocation2 + $0xe0] sm:$0xff] }
 0x1cf   : > { %1341 = vmatpush.bf16.msra.mxu0 %v2291_v45  ;;  %2330 = vmatpush.bf16.msra.mxu2 %v2291_v45  ;;  %v1152_v43 = vadd.f32 %v3204_v47, %v1084_v41  ;;  %v1153_v44 = vadd.f32 %v3204_v47, %v1085_v42  ;;  %v1184_v45 = vmax.f32 %v1120_v39, 0.0  ;;  %v1087_v60 = vld [vmem:[#allocation2 + $0x90] sm:$0xff]  ;;  %v1154_v61 = vadd.f32 %v3204_v47, %v1086_v59  ;;  %v1059_v24 = vld [vmem:[#allocation2 + $0x188] sm:$0xff]  ;;  %v1090_v27 = vld [vmem:[#allocation2 + $0xb8] sm:$0xff] }
 0x1d0   : > { %v1258_v34 = vpack.c.bf16 %v1215_v33, %v1214_v32  ;;  %v1242_v35 = vpack.c.bf16 %v1183_v31, %v1182_v30  ;;  %v1155_v62 = vadd.f32 %v3204_v47, %v1087_v60  ;;  %v2297_v6 = vld [vmem:[#allocation10 + $0x10] sm:$0xff]  ;;  %v1125_v11 = vadd.f32 %v3204_v47, %v1057_v8  ;;  %v1091_v28 = vld [vmem:[#allocation2 + $0x88] sm:$0xff]  ;;  %v3239_v38 = vld [vmem:[%s3608_s25] ss:$0 sm:$0xff] }
 0x1d1   : > { %v1217_v49 = vmax.f32 %v1153_v44, 0.0  ;;  %v1218_v1 = vmax.f32 %v1154_v61, 0.0  ;;  %v1089_v13 = vld [vmem:[#allocation2 + $0xd0] sm:$0xff]  ;;  %v1156_v15 = vadd.f32 %v3204_v47, %v1088_v12  ;;  %v1126_v25 = vadd.f32 %v3204_v47, %v1058_v23  ;;  %v1060_v39 = vld [vmem:[#allocation2 + $0x138] sm:$0xff]  ;;  %v1062_v61 = vld [vmem:[#allocation2 + $0x80] sm:$0xff] }
 0x1d2   : > { %1673 = vmatpush.bf16.msra.mxu1 %v2300_v55  ;;  %2337 = vmatpush.bf16.msra.mxu3 %v2300_v55  ;;  %v1219_v2 = vmax.f32 %v1155_v62, 0.0  ;;  %v1157_v16 = vadd.f32 %v3204_v47, %v1089_v13  ;;  %v1189_v18 = vmax.f32 %v1125_v11, 0.0  ;;  %v1127_v26 = vadd.f32 %v3204_v47, %v1059_v24  ;;  %v1063_v62 = vld [vmem:[#allocation2 + $0x1a8] sm:$0xff] }
 0x1d3   : > { %1342 = vmatpush.bf16.msra.mxu0 %v2290_v46  ;;  %2331 = vmatpush.bf16.msra.mxu2 %v2290_v46  ;;  %v1185_v46 = vmax.f32 %v1121_v40, 0.0  ;;  %v1220_v19 = vmax.f32 %v1156_v15, 0.0  ;;  %v1158_v29 = vadd.f32 %v3204_v47, %v1090_v27  ;;  %v1159_v30 = vadd.f32 %v3204_v47, %v1091_v28  ;;  %v1061_v40 = vld [vmem:[#allocation2 + $0x140] sm:$0xff] }
 0x1d4   : > { %v1260_v4 = vpack.c.bf16 %v1219_v2, %v1218_v1  ;;  %v1190_v31 = vmax.f32 %v1126_v25, 0.0  ;;  %v1191_v32 = vmax.f32 %v1127_v26, 0.0  ;;  %v1128_v42 = vadd.f32 %v3204_v47, %v1060_v39  ;;  %v1096_v25 = vld [vmem:[#allocation2 + $0x68] sm:$0xff]  ;;  %v1097_v26 = vld [vmem:[#allocation2 + $0x190] sm:$0xff] }
 0x1d5   : > { %v1243_v51 = vpack.c.bf16 %v1185_v46, %v1184_v45  ;;  %v1222_v33 = vmax.f32 %v1158_v29, 0.0  ;;  %v1092_v46 = vld [vmem:[#allocation2 + $0xa8] sm:$0xff]  ;;  %v1131_v1 = vadd.f32 %v3204_v47, %v1063_v62  ;;  %v1164_v27 = vadd.f32 %v3204_v47, %v1096_v25 }
 0x1d6   : > { %1674 = vmatpush.bf16.msra.mxu1 %v2299_v58  ;;  %2338 = vmatpush.bf16.msra.mxu3 %v2299_v58  ;;  %v1246_v36 = vpack.c.bf16 %v1191_v32, %v1190_v31  ;;  %v1165_v28 = vadd.f32 %v3204_v47, %v1097_v26 }
 0x1d7   : > { %1343 = vmatpush.bf16.msra.mxu0 %v2289_v48  ;;  %2332 = vmatpush.bf16.msra.mxu2 %v2289_v48  ;;  %v1216_v48 = vmax.f32 %v1152_v43, 0.0  ;;  %v1129_v43 = vadd.f32 %v3204_v47, %v1061_v40  ;;  %v1195_v11 = vmax.f32 %v1131_v1, 0.0 }
 0x1d9   : > { %v1259_v50 = vpack.c.bf16 %v1217_v49, %v1216_v48  ;;  %v1093_v48 = vld [vmem:[#allocation2 + $0x1c8] sm:$0xff]  ;;  %v1160_v49 = vadd.f32 %v3204_v47, %v1092_v46 }
 0x1da   : > { %1675 = vmatpush.bf16.msra.mxu1 %v2298_v3  ;;  %2339 = vmatpush.bf16.msra.mxu3 %v2298_v3 }
 0x1db   : > { %1344 = vmatpush.bf16.msra.mxu0 %v2288_v53  ;;  %2333 = vmatpush.bf16.msra.mxu2 %v2288_v53  ;;  %v1054_v53 = vld [vmem:[#allocation2 + $0x120] sm:$0xff]  ;;  %v1224_v55 = vmax.f32 %v1160_v49, 0.0  ;;  %v1098_v49 = vld [vmem:[#allocation2 + $0x198] sm:$0xff] }
 0x1de   : > { %1676 = vmatpush.bf16.msra.mxu1 %v2297_v6  ;;  %2340 = vmatpush.bf16.msra.mxu3 %v2297_v6 }
 0x1df   : > { %1345 = vmatpush.bf16.msra.mxu0 %v2287_v56  ;;  %2334 = vmatpush.bf16.msra.mxu2 %v2287_v56  ;;  %v1122_v56 = vadd.f32 %v3204_v47, %v1054_v53  ;;  %v1192_v53 = vmax.f32 %v1128_v42, 0.0  ;;  %v1067_v42 = vld [vmem:[#allocation2 + $0xf8] sm:$0xff] }
 0x1e1   : > { %v1186_v63 = vmax.f32 %v1122_v56, 0.0 }
 0x1e2   : > { %1346 = vmatmul.bf16.vlgmr.msra.gmra.mxu0 %v1238_v57  ;;  %1441 = vmatmul.bf16.vlgmr.msra.gmra.mxu2 %v1257_v20  ;;  %v1123_v57 = vadd.f32 %v3204_v47, %v1055_v54  ;;  %v1221_v20 = vmax.f32 %v1157_v16, 0.0  ;;  %v1193_v54 = vmax.f32 %v1129_v43, 0.0 }
 0x1e3   : > { %1677 = vmatpush.bf16.msra.mxu1 %v2296_v9  ;;  %2341 = vmatpush.bf16.msra.mxu3 %v2296_v9 }
 0x1e4   : > { %v1247_v59 = vpack.c.bf16 %v1193_v54, %v1192_v53 }
 0x1e7   : > { %1678 = vmatpush.bf16.msra.mxu1 %v2295_v14  ;;  %2342 = vmatpush.bf16.msra.mxu3 %v2295_v14 }
 0x1f2   : > { %1351 = vmatmul.bf16.gmra.mxu0 %v1239_v0  ;;  %1446 = vmatmul.bf16.gmra.mxu2 %v1258_v34  ;;  %v1187_v0 = vmax.f32 %v1123_v57, 0.0  ;;  %v1223_v34 = vmax.f32 %v1159_v30, 0.0 }
 0x1f4   : > { %v1244_v5 = vpack.c.bf16 %v1187_v0, %v1186_v63  ;;  %v1130_v0 = vadd.f32 %v3204_v47, %v1062_v61 }
 0x202   : > { %1356 = vmatmul.bf16.gmra.mxu0 %v1240_v7  ;;  %1451 = vmatmul.bf16.gmra.mxu2 %v1259_v50  ;;  %v1056_v7 = vld [vmem:[#allocation2 + $0x108] sm:$0xff]  ;;  %v1161_v50 = vadd.f32 %v3204_v47, %v1093_v48 }
 0x203   : > { %v1124_v10 = vadd.f32 %v3204_v47, %v1056_v7 }
 0x204   : > { %v1225_v56 = vmax.f32 %v1161_v50, 0.0  ;;  %v1099_v50 = vld [vmem:[#allocation2 + $0x38] sm:$0xff] }
 0x205   : > { %v1188_v17 = vmax.f32 %v1124_v10, 0.0  ;;  %v1194_v10 = vmax.f32 %v1130_v0, 0.0 }
 0x206   : > { %v1263_v58 = vpack.c.bf16 %v1225_v56, %v1224_v55 }
 0x207   : > { %v1245_v22 = vpack.c.bf16 %v1189_v18, %v1188_v17  ;;  %v1248_v16 = vpack.c.bf16 %v1195_v11, %v1194_v10  ;;  %v1064_v18 = vld [vmem:[#allocation2 + $0x1b8] sm:$0xff] }
 0x212   : > { %1361 = vmatmul.bf16.gmra.mxu0 %v1241_v21  ;;  %1456 = vmatmul.bf16.gmra.mxu2 %v1260_v4  ;;  %v1261_v21 = vpack.c.bf16 %v1221_v20, %v1220_v19  ;;  %v1094_v4 = vld [vmem:[#allocation2 + $0x170] sm:$0xff]  ;;  %v1065_v19 = vld [vmem:[#allocation2 + $0x28] sm:$0xff] }
 0x213   : > { %v1162_v6 = vadd.f32 %v3204_v47, %v1094_v4 }
 0x215   : > { %v1226_v12 = vmax.f32 %v1162_v6, 0.0  ;;  %v1068_v6 = vld [vmem:[#allocation2 + $0x160] sm:$0xff] }
 0x222   : > { %1366 = vmatmul.bf16.gmra.mxu0 %v1242_v35  ;;  %1461 = vmatmul.bf16.gmra.mxu2 %v1261_v21  ;;  %v1262_v35 = vpack.c.bf16 %v1223_v34, %v1222_v33  ;;  %v1132_v21 = vadd.f32 %v3204_v47, %v1064_v18  ;;  %v1228_v33 = vmax.f32 %v1164_v27, 0.0  ;;  %v1229_v34 = vmax.f32 %v1165_v28, 0.0 }
 0x224   : > { %v1196_v31 = vmax.f32 %v1132_v21, 0.0 }
 0x232   : > { %1371 = vmatmul.bf16.gmra.mxu0 %v1243_v51  ;;  %1466 = vmatmul.bf16.gmra.mxu2 %v1262_v35 }
 0x242   : > { %1376 = vmatmul.bf16.gmra.mxu0 %v1244_v5  ;;  %1471 = vmatmul.bf16.gmra.mxu2 %v1263_v58  ;;  %v1095_v5 = vld [vmem:[#allocation2 + $0x178] sm:$0xff] }
 0x243   : > { %v1163_v7 = vadd.f32 %v3204_v47, %v1095_v5 }
 0x245   : > { %v1227_v13 = vmax.f32 %v1163_v7, 0.0  ;;  %v1069_v7 = vld [vmem:[#allocation2 + $0x30] sm:$0xff] }
 0x246   : > { %v1137_v10 = vadd.f32 %v3204_v47, %v1069_v7  ;;  %v1104_v7 = vld [vmem:[#allocation2 + $0x58] sm:$0xff] }
 0x247   : > { %v1264_v15 = vpack.c.bf16 %v1227_v13, %v1226_v12  ;;  %v1100_v13 = vld [vmem:[#allocation2 + $0xc0] sm:$0xff] }
 0x252   : > { %1381 = vmatmul.bf16.gmra.mxu0 %v1245_v22  ;;  %1476 = vmatmul.bf16.gmra.mxu2 %v1264_v15  ;;  %v1133_v22 = vadd.f32 %v3204_v47, %v1065_v19  ;;  %v1168_v15 = vadd.f32 %v3204_v47, %v1100_v13 }
 0x254   : > { %v1197_v32 = vmax.f32 %v1133_v22, 0.0 }
 0x25f   : > { %v1347_v37 = vpop.f32.mrf.mxu0 }
 0x260   : > { %v1348_v41 = vadd.f32 %v3239_v38, %v1347_v37  ;;  %v1249_v37 = vpack.c.bf16 %v1197_v32, %v1196_v31 }
 0x262   : > { %1386 = vmatmul.bf16.gmra.mxu0 %v1246_v36  ;;  %v1507_v51 = vmax.f32 %v1348_v41, 0.0  ;;  %v1265_v36 = vpack.c.bf16 %v1229_v34, %v1228_v33  ;;  %v1066_v41 = vld [vmem:[#allocation2 + $0x1e8] sm:$0xff]  ;;  %v1070_v34 = vld [vmem:[#allocation2 + $0x1e0] sm:$0xff] }
 0x264   : > { %1481 = vmatmul.bf16.gmra.mxu2 %v1265_v36 }
 0x265   : > { %v1442_v40 = vpop.f32.mrf.mxu2 }
 0x266   : > { %v1443_v58 = vadd.f32 %v3239_v38, %v1442_v40 }
 0x267   : > { %v1349_v44 = vpop.f32.mrf.mxu0 }
 0x268   : > { %v1350_v45 = vadd.f32 %v3239_v38, %v1349_v44  ;;  %v1134_v44 = vadd.f32 %v3204_v47, %v1066_v41 }
 0x26a   : > { %v1508_v52 = vmax.f32 %v1350_v45, 0.0  ;;  %v1135_v45 = vadd.f32 %v3204_v47, %v1067_v42  ;;  %v1198_v55 = vmax.f32 %v1134_v44, 0.0  ;;  %v1102_v42 = vld [vmem:[#allocation2 + $0x158] sm:$0xff] }
 0x26b   : > { %v1170_v44 = vadd.f32 %v3204_v47, %v1102_v42 }
 0x26c   : > { %v1571_v57 = vpack.c.bf16 %v1508_v52, %v1507_v51  ;;  %v1166_v51 = vadd.f32 %v3204_v47, %v1098_v49  ;;  %v1167_v52 = vadd.f32 %v3204_v47, %v1099_v50  ;;  %v1199_v56 = vmax.f32 %v1135_v45, 0.0 }
 0x26e   : > { %1679 = vmatmul.bf16.vlgmr.msra.gmra.mxu1 %v1571_v57  ;;  %v1444_v57 = vpop.f32.mrf.mxu2  ;;  %v1231_v61 = vmax.f32 %v1167_v52, 0.0 }
 0x26f   : > { %v1352_v60 = vpop.f32.mrf.mxu0 }
 0x270   : > { %v1353_v63 = vadd.f32 %v3239_v38, %v1352_v60  ;;  %v1230_v60 = vmax.f32 %v1166_v51, 0.0 }
 0x272   : > { %1391 = vmatmul.bf16.gmra.mxu0 %v1247_v59  ;;  %v1509_v8 = vmax.f32 %v1353_v63, 0.0  ;;  %v1445_v59 = vadd.f32 %v3239_v38, %v1444_v57  ;;  %v1545_v63 = vmax.f32 %v1443_v58, 0.0  ;;  %v1266_v1 = vpack.c.bf16 %v1231_v61, %v1230_v60 }
 0x274   : > { %v1546_v0 = vmax.f32 %v1445_v59, 0.0  ;;  %1486 = vmatmul.bf16.gmra.mxu2 %v1266_v1  ;;  %v1073_v1 = vld [vmem:[#allocation2 + $0x8] sm:$0xff] }
 0x276   : > { %v1590_v4 = vpack.c.bf16 %v1546_v0, %v1545_v63  ;;  %v1447_v5 = vpop.f32.mrf.mxu2  ;;  %v1072_v0 = vld [vmem:[#allocation2 + $0xf0] sm:$0xff] }
 0x277   : > { %v1354_v2 = vpop.f32.mrf.mxu0  ;;  %v1448_v22 = vadd.f32 %v3239_v38, %v1447_v5 }
 0x278   : > { %v1355_v3 = vadd.f32 %v3239_v38, %v1354_v2  ;;  %v1250_v2 = vpack.c.bf16 %v1199_v56, %v1198_v55  ;;  %1774 = vmatmul.bf16.vlgmr.msra.gmra.mxu3 %v1590_v4  ;;  %v1141_v4 = vadd.f32 %v3204_v47, %v1073_v1 }
 0x279   : > { %v1547_v27 = vmax.f32 %v1448_v22, 0.0 }
 0x27a   : > { %v1510_v9 = vmax.f32 %v1355_v3, 0.0 }
 0x27c   : > { %v1572_v14 = vpack.c.bf16 %v1510_v9, %v1509_v8  ;;  %v1136_v9 = vadd.f32 %v3204_v47, %v1068_v6 }
 0x27e   : > { %1684 = vmatmul.bf16.gmra.mxu1 %v1572_v14  ;;  %v1101_v14 = vld [vmem:[#allocation2 + $0x1c0] sm:$0xff]  ;;  %v1200_v19 = vmax.f32 %v1136_v9, 0.0  ;;  %v1449_v21 = vpop.f32.mrf.mxu2  ;;  %v1172_v9 = vadd.f32 %v3204_v47, %v1104_v7 }
 0x27f   : > { %v1357_v17 = vpop.f32.mrf.mxu0 }
 0x280   : > { %v1358_v20 = vadd.f32 %v3239_v38, %v1357_v17 }
 0x282   : > { %1396 = vmatmul.bf16.gmra.mxu0 %v1248_v16  ;;  %v1511_v29 = vmax.f32 %v1358_v20, 0.0  ;;  %v1169_v16 = vadd.f32 %v3204_v47, %v1101_v14  ;;  %v1201_v20 = vmax.f32 %v1137_v10, 0.0  ;;  %v1205_v14 = vmax.f32 %v1141_v4, 0.0 }
 0x284   : > { %v1233_v25 = vmax.f32 %v1169_v16, 0.0 }
 0x286   : > { %v1452_v33 = vpop.f32.mrf.mxu2 }
 0x287   : > { %v1359_v23 = vpop.f32.mrf.mxu0  ;;  %v1453_v52 = vadd.f32 %v3239_v38, %v1452_v33 }
 0x288   : > { %v1360_v24 = vadd.f32 %v3239_v38, %v1359_v23  ;;  %v1450_v23 = vadd.f32 %v3239_v38, %v1449_v21 }
 0x289   : > { %v1549_v57 = vmax.f32 %v1453_v52, 0.0  ;;  %v1077_v52 = vld [vmem:[#allocation2 + $0xc8] sm:$0xff] }
 0x28a   : > { %v1512_v30 = vmax.f32 %v1360_v24, 0.0  ;;  %v1232_v24 = vmax.f32 %v1168_v15, 0.0  ;;  %v1548_v28 = vmax.f32 %v1450_v23, 0.0 }
 0x28c   : > { %v1573_v35 = vpack.c.bf16 %v1512_v30, %v1511_v29  ;;  %v1267_v29 = vpack.c.bf16 %v1233_v25, %v1232_v24  ;;  %v1251_v30 = vpack.c.bf16 %v1201_v20, %v1200_v19  ;;  %v1591_v32 = vpack.c.bf16 %v1548_v28, %v1547_v27  ;;  %v1074_v28 = vld [vmem:[#allocation2 + $0x148] sm:$0xff] }
 0x28e   : > { %1689 = vmatmul.bf16.gmra.mxu1 %v1573_v35  ;;  %1491 = vmatmul.bf16.gmra.mxu2 %v1267_v29  ;;  %v1071_v35 = vld [vmem:[#allocation2] sm:$0xff]  ;;  %v1454_v51 = vpop.f32.mrf.mxu2  ;;  %v1075_v29 = vld [vmem:[#allocation2 + $0x1d0] sm:$0xff] }
 0x28f   : > { %v1362_v39 = vpop.f32.mrf.mxu0  ;;  %1779 = vmatmul.bf16.gmra.mxu3 %v1591_v32  ;;  %v1143_v32 = vadd.f32 %v3204_v47, %v1075_v29 }
 0x290   : > { %v1363_v43 = vadd.f32 %v3239_v38, %v1362_v39  ;;  %v1139_v39 = vadd.f32 %v3204_v47, %v1071_v35 }
 0x292   : > { %1401 = vmatmul.bf16.gmra.mxu0 %v1249_v37  ;;  %v1513_v53 = vmax.f32 %v1363_v43, 0.0  ;;  %v1138_v37 = vadd.f32 %v3204_v47, %v1070_v34  ;;  %v1103_v43 = vld [vmem:[#allocation2 + $0x10] sm:$0xff]  ;;  %v1203_v50 = vmax.f32 %v1139_v39, 0.0 }
 0x293   : > { %v1171_v45 = vadd.f32 %v3204_v47, %v1103_v43 }
 0x294   : > { %v1202_v49 = vmax.f32 %v1138_v37, 0.0 }
 0x295   : > { %v1235_v55 = vmax.f32 %v1171_v45, 0.0 }
 0x296   : > { %v1252_v60 = vpack.c.bf16 %v1203_v50, %v1202_v49  ;;  %v1457_v63 = vpop.f32.mrf.mxu2 }
 0x297   : > { %v1364_v46 = vpop.f32.mrf.mxu0  ;;  %v1458_v16 = vadd.f32 %v3239_v38, %v1457_v63 }
 0x298   : > { %v1365_v48 = vadd.f32 %v3239_v38, %v1364_v46 }
 0x299   : > { %v1551_v21 = vmax.f32 %v1458_v16, 0.0 }
 0x29a   : > { %v1514_v54 = vmax.f32 %v1365_v48, 0.0 }
 0x29c   : > { %v1574_v62 = vpack.c.bf16 %v1514_v54, %v1513_v53  ;;  %v1455_v53 = vadd.f32 %v3239_v38, %v1454_v51  ;;  %v1234_v54 = vmax.f32 %v1170_v44, 0.0  ;;  %v1076_v51 = vld [vmem:[#allocation2 + $0x100] sm:$0xff] }
 0x29e   : > { %1694 = vmatmul.bf16.gmra.mxu1 %v1574_v62  ;;  %v1550_v58 = vmax.f32 %v1455_v53, 0.0  ;;  %v1268_v59 = vpack.c.bf16 %v1235_v55, %v1234_v54  ;;  %v1459_v15 = vpop.f32.mrf.mxu2  ;;  %v1144_v54 = vadd.f32 %v3204_v47, %v1076_v51  ;;  %v1145_v55 = vadd.f32 %v3204_v47, %v1077_v52 }
 0x29f   : > { %v1367_v3 = vpop.f32.mrf.mxu0 }
 0x2a0   : > { %v1368_v8 = vadd.f32 %v3239_v38, %v1367_v3  ;;  %1496 = vmatmul.bf16.gmra.mxu2 %v1268_v59  ;;  %v1592_v62 = vpack.c.bf16 %v1550_v58, %v1549_v57  ;;  %v1140_v3 = vadd.f32 %v3204_v47, %v1072_v0 }
 0x2a2   : > { %1406 = vmatmul.bf16.gmra.mxu0 %v1250_v2  ;;  %v1515_v17 = vmax.f32 %v1368_v8, 0.0  ;;  %1784 = vmatmul.bf16.gmra.mxu3 %v1592_v62  ;;  %v1105_v8 = vld [vmem:[#allocation2 + $0xa0] sm:$0xff]  ;;  %v1204_v13 = vmax.f32 %v1140_v3, 0.0  ;;  %v1209_v62 = vmax.f32 %v1145_v55, 0.0 }
 0x2a3   : > { %v1173_v10 = vadd.f32 %v3204_v47, %v1105_v8 }
 0x2a4   : > { %v1253_v24 = vpack.c.bf16 %v1205_v14, %v1204_v13  ;;  %v1079_v13 = vld [vmem:[#allocation2 + $0x1f8] sm:$0xff] }
 0x2a5   : > { %v1237_v19 = vmax.f32 %v1173_v10, 0.0 }
 0x2a6   : > { %v1462_v27 = vpop.f32.mrf.mxu2 }
 0x2a7   : > { %v1369_v11 = vpop.f32.mrf.mxu0 }
 0x2a8   : > { %v1370_v12 = vadd.f32 %v3239_v38, %v1369_v11 }
 0x2aa   : > { %v1516_v18 = vmax.f32 %v1370_v12, 0.0 }
 0x2ac   : > { %v1575_v26 = vpack.c.bf16 %v1516_v18, %v1515_v17  ;;  %v1460_v17 = vadd.f32 %v3239_v38, %v1459_v15  ;;  %v1236_v18 = vmax.f32 %v1172_v9, 0.0 }
 0x2ae   : > { %1699 = vmatmul.bf16.gmra.mxu1 %v1575_v26  ;;  %v1552_v22 = vmax.f32 %v1460_v17, 0.0  ;;  %v1269_v23 = vpack.c.bf16 %v1237_v19, %v1236_v18  ;;  %v1464_v37 = vpop.f32.mrf.mxu2  ;;  %v1147_v19 = vadd.f32 %v3204_v47, %v1079_v13 }
 0x2af   : > { %v1372_v31 = vpop.f32.mrf.mxu0  ;;  %v1465_v42 = vadd.f32 %v3239_v38, %v1464_v37 }
 0x2b0   : > { %v1373_v36 = vadd.f32 %v3239_v38, %v1372_v31  ;;  %1501 = vmatmul.bf16.gmra.mxu2 %v1269_v23  ;;  %v1593_v26 = vpack.c.bf16 %v1552_v22, %v1551_v21  ;;  %v1142_v31 = vadd.f32 %v3204_v47, %v1074_v28 }
 0x2b1   : > { %v1554_v45 = vmax.f32 %v1465_v42, 0.0 }
 0x2b2   : > { %1411 = vmatmul.bf16.gmra.mxu0 %v1251_v30  ;;  %v1517_v46 = vmax.f32 %v1373_v36, 0.0  ;;  %1789 = vmatmul.bf16.gmra.mxu3 %v1593_v26  ;;  %v1206_v39 = vmax.f32 %v1142_v31, 0.0 }
 0x2b6   : > { %v1467_v50 = vpop.f32.mrf.mxu2 }
 0x2b7   : > { %v1374_v40 = vpop.f32.mrf.mxu0  ;;  %v1468_v0 = vadd.f32 %v3239_v38, %v1467_v50 }
 0x2b8   : > { %v1375_v41 = vadd.f32 %v3239_v38, %v1374_v40  ;;  %v1207_v40 = vmax.f32 %v1143_v32, 0.0 }
 0x2b9   : > { %v1555_v3 = vmax.f32 %v1468_v0, 0.0 }
 0x2ba   : > { %v1518_v48 = vmax.f32 %v1375_v41, 0.0  ;;  %v1463_v41 = vadd.f32 %v3239_v38, %v1462_v27  ;;  %v1211_v27 = vmax.f32 %v1147_v19, 0.0 }
 0x2bc   : > { %v1576_v56 = vpack.c.bf16 %v1518_v48, %v1517_v46  ;;  %v1553_v44 = vmax.f32 %v1463_v41, 0.0  ;;  %v1254_v46 = vpack.c.bf16 %v1207_v40, %v1206_v39 }
 0x2be   : > { %1704 = vmatmul.bf16.gmra.mxu1 %v1576_v56  ;;  %v1594_v49 = vpack.c.bf16 %v1554_v45, %v1553_v44 }
 0x2bf   : > { %v1377_v61 = vpop.f32.mrf.mxu0 }
 0x2c0   : > { %v1378_v2 = vadd.f32 %v3239_v38, %v1377_v61  ;;  %v1208_v61 = vmax.f32 %v1144_v54, 0.0 }
 0x2c2   : > { %1416 = vmatmul.bf16.gmra.mxu0 %v1252_v60  ;;  %v1519_v11 = vmax.f32 %v1378_v2, 0.0  ;;  %1794 = vmatmul.bf16.gmra.mxu3 %v1594_v49  ;;  %v1469_v60 = vpop.f32.mrf.mxu2 }
 0x2c3   : > { %v1470_v1 = vadd.f32 %v3239_v38, %v1469_v60 }
 0x2c5   : > { %v1556_v4 = vmax.f32 %v1470_v1, 0.0 }
 0x2c7   : > { %v1379_v5 = vpop.f32.mrf.mxu0  ;;  %v1595_v8 = vpack.c.bf16 %v1556_v4, %v1555_v3 }
 0x2c8   : > { %v1380_v6 = vadd.f32 %v3239_v38, %v1379_v5  ;;  %v3306_v5 = vld [vmem:[%s3609_s2] ss:$0 sm:$0xff] }
 0x2ca   : > { %v1520_v12 = vmax.f32 %v1380_v6, 0.0  ;;  %v1255_v6 = vpack.c.bf16 %v1209_v62, %v1208_v61  ;;  %v1472_v10 = vpop.f32.mrf.mxu2 }
 0x2cb   : > { %v1473_v29 = vadd.f32 %v3239_v38, %v1472_v10 }
 0x2cc   : > { %v1577_v20 = vpack.c.bf16 %v1520_v12, %v1519_v11  ;;  %v1078_v11 = vld [vmem:[#allocation2 + $0x40] sm:$0xff] }
 0x2cd   : > { %v1146_v15 = vadd.f32 %v3204_v47, %v1078_v11  ;;  %v1557_v32 = vmax.f32 %v1473_v29, 0.0 }
 0x2ce   : > { %1709 = vmatmul.bf16.gmra.mxu1 %v1577_v20 }
 0x2cf   : > { %v1382_v25 = vpop.f32.mrf.mxu0  ;;  %v1210_v26 = vmax.f32 %v1146_v15, 0.0 }
 0x2d0   : > { %v1383_v30 = vadd.f32 %v3239_v38, %v1382_v25 }
 0x2d1   : > { %v1256_v47 = vpack.c.bf16 %v1211_v27, %v1210_v26 }
 0x2d2   : > { %1421 = vmatmul.bf16.gmra.mxu0 %v1253_v24  ;;  %v1521_v35 = vmax.f32 %v1383_v30, 0.0  ;;  %1799 = vmatmul.bf16.gmra.mxu3 %v1595_v8  ;;  %v1474_v25 = vpop.f32.mrf.mxu2 }
 0x2d3   : > { %v1475_v30 = vadd.f32 %v3239_v38, %v1474_v25 }
 0x2d7   : > { %v1384_v33 = vpop.f32.mrf.mxu0 }
 0x2d8   : > { %v1385_v34 = vadd.f32 %v3239_v38, %v1384_v33  ;;  %v1558_v33 = vmax.f32 %v1475_v30, 0.0 }
 0x2da   : > { %v1522_v36 = vmax.f32 %v1385_v34, 0.0  ;;  %v1477_v37 = vpop.f32.mrf.mxu2 }
 0x2db   : > { %v1478_v52 = vadd.f32 %v3239_v38, %v1477_v37 }
 0x2dc   : > { %v1578_v43 = vpack.c.bf16 %v1522_v36, %v1521_v35  ;;  %v1596_v35 = vpack.c.bf16 %v1558_v33, %v1557_v32 }
 0x2dd   : > { %v1559_v55 = vmax.f32 %v1478_v52, 0.0 }
 0x2de   : > { %1714 = vmatmul.bf16.gmra.mxu1 %v1578_v43 }
 0x2df   : > { %v1387_v48 = vpop.f32.mrf.mxu0 }
 0x2e0   : > { %v1388_v53 = vadd.f32 %v3239_v38, %v1387_v48 }
 0x2e2   : > { %1426 = vmatmul.bf16.gmra.mxu0 %v1254_v46  ;;  %v1523_v58 = vmax.f32 %v1388_v53, 0.0  ;;  %1804 = vmatmul.bf16.gmra.mxu3 %v1596_v35  ;;  %v1479_v50 = vpop.f32.mrf.mxu2 }
 0x2e3   : > { %v1480_v53 = vadd.f32 %v3239_v38, %v1479_v50 }
 0x2e7   : > { %v1389_v56 = vpop.f32.mrf.mxu0 }
 0x2e8   : > { %v1390_v57 = vadd.f32 %v3239_v38, %v1389_v56  ;;  %v1560_v56 = vmax.f32 %v1480_v53, 0.0 }
 0x2ea   : > { %v1524_v59 = vmax.f32 %v1390_v57, 0.0  ;;  %v1482_v60 = vpop.f32.mrf.mxu2 }
 0x2eb   : > { %v1680_v63 = vpop.f32.mrf.mxu1  ;;  %v1483_v10 = vadd.f32 %v3239_v38, %v1482_v60 }
 0x2ec   : > { %v1579_v2 = vpack.c.bf16 %v1524_v59, %v1523_v58  ;;  %v1681_v9 = vadd.f32 %v3306_v5, %v1680_v63  ;;  %v1597_v58 = vpack.c.bf16 %v1560_v56, %v1559_v55 }
 0x2ed   : > { %v1561_v13 = vmax.f32 %v1483_v10, 0.0 }
 0x2ee   : > { %1719 = vmatmul.bf16.gmra.mxu1 %v1579_v2  ;;  %v1840_v16 = vmax.f32 %v1681_v9, 0.0 }
 0x2ef   : > { %v1392_v7 = vpop.f32.mrf.mxu0 }
 0x2f0   : > { %v1393_v17 = vadd.f32 %v3239_v38, %v1392_v7 }
 0x2f2   : > { %1431 = vmatmul.bf16.gmra.mxu0 %v1255_v6  ;;  %v1525_v23 = vmax.f32 %v1393_v17, 0.0  ;;  %1809 = vmatmul.bf16.gmra.mxu3 %v1597_v58  ;;  %v1484_v8 = vpop.f32.mrf.mxu2 }
 0x2f3   : > { %v1682_v12 = vpop.f32.mrf.mxu1  ;;  %v1485_v11 = vadd.f32 %v3239_v38, %v1484_v8 }
 0x2f4   : > { %v1683_v14 = vadd.f32 %v3306_v5, %v1682_v12 }
 0x2f6   : > { %v1841_v18 = vmax.f32 %v1683_v14, 0.0  ;;  %v1562_v14 = vmax.f32 %v1485_v11, 0.0 }
 0x2f7   : > { %v1394_v20 = vpop.f32.mrf.mxu0 }
 0x2f8   : > { %v1395_v21 = vadd.f32 %v3239_v38, %v1394_v20  ;;  %v3314_v22 = vpack.c.bf16 %v1841_v18, %v1840_v16  ;;  %v1598_v16 = vpack.c.bf16 %v1562_v14, %v1561_v13 }
 0x2fa   : > { %v1526_v24 = vmax.f32 %v1395_v21, 0.0  ;;  %v1487_v18 = vpop.f32.mrf.mxu2 }
 0x2fb   : > { %v1685_v28 = vpop.f32.mrf.mxu1  ;;  %v1775_v21 = vpop.f32.mrf.mxu3  ;;  %v1488_v33 = vadd.f32 %v3239_v38, %v1487_v18 }
 0x2fc   : > { %v1580_v31 = vpack.c.bf16 %v1526_v24, %v1525_v23  ;;  %v1686_v36 = vadd.f32 %v3306_v5, %v1685_v28  ;;  %v1776_v37 = vadd.f32 %v3306_v5, %v1775_v21 }
 0x2fe   : > { %1724 = vmatmul.bf16.gmra.mxu1 %v1580_v31  ;;  %v1842_v41 = vmax.f32 %v1686_v36, 0.0  ;;  %v1563_v36 = vmax.f32 %v1488_v33, 0.0 }
 0x2ff   : > { %v1397_v34 = vpop.f32.mrf.mxu0 }
 0x300   : > { %v1398_v42 = vadd.f32 %v3239_v38, %v1397_v34 }
 0x302   : > { %1436 = vmatmul.bf16.gmra.mxu0 %v1256_v47  ;;  %v1527_v48 = vmax.f32 %v1398_v42, 0.0  ;;  %1814 = vmatmul.bf16.gmra.mxu3 %v1598_v16  ;;  %v1489_v31 = vpop.f32.mrf.mxu2  ;;  %v1878_v42 = vmax.f32 %v1776_v37, 0.0 }
 0x303   : > { %v1687_v39 = vpop.f32.mrf.mxu1  ;;  %v1490_v47 = vadd.f32 %v3239_v38, %v1489_v31  ;;  %v1777_v35 = vpop.f32.mrf.mxu3 }
 0x304   : > { %v1688_v40 = vadd.f32 %v3306_v5, %v1687_v39 }
 0x305   : > { %v1564_v39 = vmax.f32 %v1490_v47, 0.0 }
 0x306   : > { %v1843_v43 = vmax.f32 %v1688_v40, 0.0  ;;  %v1778_v40 = vadd.f32 %v3306_v5, %v1777_v35 }
 0x307   : > { %v1399_v44 = vpop.f32.mrf.mxu0 }
 0x308   : > { %v1400_v45 = vadd.f32 %v3239_v38, %v1399_v44  ;;  %v3322_v46 = vpack.c.bf16 %v1843_v43, %v1842_v41  ;;  %v1879_v43 = vmax.f32 %v1778_v40, 0.0  ;;  %v1599_v44 = vpack.c.bf16 %v1564_v39, %v1563_v36 }
 0x30a   : > { %v1528_v49 = vmax.f32 %v1400_v45, 0.0  ;;  %v3344_v45 = vpack.c.bf16 %v1879_v43, %v1878_v42 }
 0x30b   : > { %v1690_v51 = vpop.f32.mrf.mxu1 }
 0x30c   : > { %v1581_v54 = vpack.c.bf16 %v1528_v49, %v1527_v48  ;;  %v1691_v59 = vadd.f32 %v3306_v5, %v1690_v51 }
 0x30e   : > { %1729 = vmatmul.bf16.gmra.mxu1 %v1581_v54  ;;  %v1844_v63 = vmax.f32 %v1691_v59, 0.0 }
 0x30f   : > { %v1402_v57 = vpop.f32.mrf.mxu0 }
 0x310   : > { %v1403_v0 = vadd.f32 %v3239_v38, %v1402_v57 }
 0x311   : > { %v1492_v49 = vpop.f32.mrf.mxu2 }
 0x312   : > { %v1529_v6 = vmax.f32 %v1403_v0, 0.0  ;;  %1819 = vmatmul.bf16.gmra.mxu3 %v1599_v44  ;;  %v3348_v52 = vpop.f32.mrf.mxu3 }
 0x313   : > { %v1692_v61 = vpop.f32.mrf.mxu1 }
 0x314   : > { %v1693_v62 = vadd.f32 %v3306_v5, %v1692_v61 }
 0x316   : > { %v1845_v1 = vmax.f32 %v1693_v62, 0.0 }
 0x317   : > { %v1404_v2 = vpop.f32.mrf.mxu0 }
 0x318   : > { %v1405_v3 = vadd.f32 %v3239_v38, %v1404_v2  ;;  %v3330_v4 = vpack.c.bf16 %v1845_v1, %v1844_v63  ;;  %v1493_v63 = vadd.f32 %v3239_v38, %v1492_v49 }
 0x319   : > { %v1494_v61 = vpop.f32.mrf.mxu2 }
 0x31a   : > { %v1530_v7 = vmax.f32 %v1405_v3, 0.0  ;;  %v1495_v0 = vadd.f32 %v3239_v38, %v1494_v61  ;;  %v3358_v2 = vpop.f32.mrf.mxu3  ;;  %v1565_v3 = vmax.f32 %v1493_v63, 0.0 }
 0x31b   : > { %v1695_v9 = vpop.f32.mrf.mxu1 }
 0x31c   : > { %v1582_v12 = vpack.c.bf16 %v1530_v7, %v1529_v6  ;;  %v1696_v17 = vadd.f32 %v3306_v5, %v1695_v9  ;;  %v1566_v6 = vmax.f32 %v1495_v0, 0.0 }
 0x31e   : > { %1734 = vmatmul.bf16.gmra.mxu1 %v1582_v12  ;;  %v1846_v23 = vmax.f32 %v1696_v17, 0.0  ;;  %v1600_v8 = vpack.c.bf16 %v1566_v6, %v1565_v3 }
 0x31f   : > { %v1407_v15 = vpop.f32.mrf.mxu0 }
 0x320   : > { %v1408_v24 = vadd.f32 %v3239_v38, %v1407_v15 }
 0x322   : > { %v1531_v29 = vmax.f32 %v1408_v24, 0.0  ;;  %1824 = vmatmul.bf16.gmra.mxu3 %v1600_v8 }
 0x323   : > { %v1697_v19 = vpop.f32.mrf.mxu1  ;;  %v1497_v9 = vpop.f32.mrf.mxu2 }
 0x324   : > { %v1698_v20 = vadd.f32 %v3306_v5, %v1697_v19  ;;  %v1498_v19 = vadd.f32 %v3239_v38, %v1497_v9 }
 0x325   : > { %v3360_v11 = vpop.f32.mrf.mxu3 }
 0x326   : > { %v1847_v25 = vmax.f32 %v1698_v20, 0.0  ;;  %v1567_v24 = vmax.f32 %v1498_v19, 0.0 }
 0x327   : > { %v1409_v26 = vpop.f32.mrf.mxu0 }
 0x328   : > { %v1410_v27 = vadd.f32 %v3239_v38, %v1409_v26  ;;  %v3338_v28 = vpack.c.bf16 %v1847_v25, %v1846_v23 }
 0x32a   : > { %v1532_v30 = vmax.f32 %v1410_v27, 0.0 }
 0x32b   : > { %v1700_v32 = vpop.f32.mrf.mxu1  ;;  %v1499_v17 = vpop.f32.mrf.mxu2 }
 0x32c   : > { %v1583_v34 = vpack.c.bf16 %v1532_v30, %v1531_v29  ;;  %v1701_v48 = vadd.f32 %v3306_v5, %v1700_v32  ;;  %v1500_v20 = vadd.f32 %v3239_v38, %v1499_v17 }
 0x32d   : > { %v3366_v23 = vpop.f32.mrf.mxu3 }
 0x32e   : > { %1739 = vmatmul.bf16.gmra.mxu1 %v1583_v34  ;;  %v1848_v53 = vmax.f32 %v1701_v48, 0.0  ;;  %v1568_v25 = vmax.f32 %v1500_v20, 0.0 }
 0x32f   : > { %v1412_v41 = vpop.f32.mrf.mxu0 }
 0x330   : > { %v1413_v54 = vadd.f32 %v3239_v38, %v1412_v41  ;;  %v1601_v27 = vpack.c.bf16 %v1568_v25, %v1567_v24 }
 0x332   : > { %v1533_v59 = vmax.f32 %v1413_v54, 0.0  ;;  %1829 = vmatmul.bf16.gmra.mxu3 %v1601_v27 }
 0x333   : > { %v1702_v50 = vpop.f32.mrf.mxu1  ;;  %v1502_v29 = vpop.f32.mrf.mxu2 }
 0x334   : > { %v1703_v51 = vadd.f32 %v3306_v5, %v1702_v50  ;;  %v1503_v39 = vadd.f32 %v3239_v38, %v1502_v29 }
 0x335   : > { %v3368_v31 = vpop.f32.mrf.mxu3 }
 0x336   : > { %v1849_v55 = vmax.f32 %v1703_v51, 0.0  ;;  %v1569_v43 = vmax.f32 %v1503_v39, 0.0 }
 0x337   : > { %v1414_v56 = vpop.f32.mrf.mxu0 }
 0x338   : > { %v1415_v57 = vadd.f32 %v3239_v38, %v1414_v56  ;;  %v3352_v58 = vpack.c.bf16 %v1849_v55, %v1848_v53 }
 0x33a   : > { %v1534_v60 = vmax.f32 %v1415_v57, 0.0 }
 0x33b   : > { %v3354_v62 = vpop.f32.mrf.mxu1  ;;  %v1504_v36 = vpop.f32.mrf.mxu2 }
 0x33c   : > { %v1584_v1 = vpack.c.bf16 %v1534_v60, %v1533_v59  ;;  %v1505_v40 = vadd.f32 %v3239_v38, %v1504_v36 }
 0x33d   : > { %v3374_v42 = vpop.f32.mrf.mxu3 }
 0x33e   : > { %1744 = vmatmul.bf16.gmra.mxu1 %v1584_v1  ;;  %v1570_v44 = vmax.f32 %v1505_v40, 0.0 }
 0x33f   : > { %v1417_v7 = vpop.f32.mrf.mxu0 }
 0x340   : > { %v1418_v12 = vadd.f32 %v3239_v38, %v1417_v7  ;;  %v1602_v48 = vpack.c.bf16 %v1570_v44, %v1569_v43 }
 0x342   : > { %v1535_v15 = vmax.f32 %v1418_v12, 0.0  ;;  %1834 = vmatmul.bf16.gmra.mxu3 %v1602_v48 }
 0x343   : > { %v1707_v10 = vpop.f32.mrf.mxu1 }
 0x345   : > { %v3378_v54 = vpop.f32.mrf.mxu3 }
 0x347   : > { %v1419_v13 = vpop.f32.mrf.mxu0 }
 0x348   : > { %v1420_v14 = vadd.f32 %v3239_v38, %v1419_v13 }
 0x34a   : > { %v1536_v16 = vmax.f32 %v1420_v14, 0.0  ;;  %v1708_v14 = vadd.f32 %v3306_v5, %v1707_v10 }
 0x34b   : > { %v1710_v18 = vpop.f32.mrf.mxu1 }
 0x34c   : > { %v1585_v21 = vpack.c.bf16 %v1536_v16, %v1535_v15  ;;  %v1711_v1 = vadd.f32 %v3306_v5, %v1710_v18  ;;  %v1706_v16 = vadd.f32 %v3306_v5, %v3354_v62  ;;  %v1851_v19 = vmax.f32 %v1708_v14, 0.0 }
 0x34d   : > { %v3384_v8 = vpop.f32.mrf.mxu3 }
 0x34e   : > { %1749 = vmatmul.bf16.gmra.mxu1 %v1585_v21  ;;  %v1852_v12 = vmax.f32 %v1711_v1, 0.0  ;;  %v1850_v25 = vmax.f32 %v1706_v16, 0.0 }
 0x34f   : > { %v1422_v26 = vpop.f32.mrf.mxu0 }
 0x350   : > { %v1423_v32 = vadd.f32 %v3239_v38, %v1422_v26 }
 0x352   : > { %v1537_v34 = vmax.f32 %v1423_v32, 0.0 }
 0x353   : > { %v1712_v30 = vpop.f32.mrf.mxu1 }
 0x354   : > { %v1713_v60 = vadd.f32 %v3306_v5, %v1712_v30  ;;  %v1909_v30 = vpack.c.bf16 %v1851_v19, %v1850_v25 }
 0x355   : > { %v1800_v21 = vpop.f32.mrf.mxu3 }
 0x356   : > { %v1853_v7 = vmax.f32 %v1713_v60, 0.0  ;;  %v1801_v36 = vadd.f32 %v3306_v5, %v1800_v21 }
 0x357   : > { %v1424_v33 = vpop.f32.mrf.mxu0 }
 0x358   : > { %v1425_v47 = vadd.f32 %v3239_v38, %v1424_v33  ;;  %v1910_v15 = vpack.c.bf16 %v1853_v7, %v1852_v12  ;;  %v1888_v39 = vmax.f32 %v1801_v36, 0.0 }
 0x35a   : > { %v1538_v35 = vmax.f32 %v1425_v47, 0.0 }
 0x35b   : > { %v1715_v37 = vpop.f32.mrf.mxu1 }
 0x35c   : > { %v1586_v41 = vpack.c.bf16 %v1538_v35, %v1537_v34  ;;  %v1716_v50 = vadd.f32 %v3306_v5, %v1715_v37 }
 0x35d   : > { %v1802_v34 = vpop.f32.mrf.mxu3 }
 0x35e   : > { %1754 = vmatmul.bf16.gmra.mxu1 %v1586_v41  ;;  %v1854_v56 = vmax.f32 %v1716_v50, 0.0  ;;  %v1803_v37 = vadd.f32 %v3306_v5, %v1802_v34 }
 0x35f   : > { %v1427_v49 = vpop.f32.mrf.mxu0 }
 0x360   : > { %v1428_v55 = vadd.f32 %v3239_v38, %v1427_v49  ;;  %v1889_v40 = vmax.f32 %v1803_v37, 0.0  ;;  %v1788_v37 = vadd.f32 %v3306_v5, %v3366_v23 }
 0x362   : > { %v1539_v63 = vmax.f32 %v1428_v55, 0.0  ;;  %v3397_v43 = vpack.c.bf16 %v1889_v40, %v1888_v39 }
 0x363   : > { %v1717_v51 = vpop.f32.mrf.mxu1 }
 0x364   : > { %v1718_v53 = vadd.f32 %v3306_v5, %v1717_v51 }
 0x365   : > { %v1805_v50 = vpop.f32.mrf.mxu3 }
 0x366   : > { %v1855_v57 = vmax.f32 %v1718_v53, 0.0  ;;  %v1806_v1 = vadd.f32 %v3306_v5, %v1805_v50 }
 0x367   : > { %v1429_v59 = vpop.f32.mrf.mxu0 }
 0x368   : > { %v1911_v61 = vpack.c.bf16 %v1855_v57, %v1854_v56  ;;  %v1430_v0 = vadd.f32 %v3239_v38, %v1429_v59 }
 0x36a   : > { %1944 = vmatpush.bf16.xpose.msrb.mxu2 %v1911_v61  ;;  %v1540_v3 = vmax.f32 %v1430_v0, 0.0 }
 0x36b   : > { %v1720_v6 = vpop.f32.mrf.mxu1 }
 0x36c   : > { %v1587_v9 = vpack.c.bf16 %v1540_v3, %v1539_v63  ;;  %v1721_v17 = vadd.f32 %v3306_v5, %v1720_v6  ;;  %v1890_v6 = vmax.f32 %v1806_v1, 0.0 }
 0x36d   : > { %v1807_v0 = vpop.f32.mrf.mxu3 }
 0x36e   : > { %1759 = vmatmul.bf16.gmra.mxu1 %v1587_v9  ;;  %v1856_v26 = vmax.f32 %v1721_v17, 0.0  ;;  %v1808_v3 = vadd.f32 %v3306_v5, %v1807_v0  ;;  %v1796_v17 = vadd.f32 %v3306_v5, %v3378_v54  ;;  %v1793_v54 = vadd.f32 %v3306_v5, %v3374_v42 }
 0x36f   : > { %v1432_v13 = vpop.f32.mrf.mxu0  ;;  %v1786_v42 = vadd.f32 %v3306_v5, %v3360_v11  ;;  %v1783_v11 = vadd.f32 %v3306_v5, %v3358_v2 }
 0x370   : > { %v1433_v24 = vadd.f32 %v3239_v38, %v1432_v13  ;;  %v1891_v7 = vmax.f32 %v1808_v3, 0.0  ;;  %v1886_v21 = vmax.f32 %v1796_v17, 0.0  ;;  %v1885_v34 = vmax.f32 %v1793_v54, 0.0 }
 0x371   : > { %v1881_v0 = vmax.f32 %v1783_v11, 0.0 }
 0x372   : > { %1945 = vmatpush.bf16.xpose.msrb.mxu2 %v1910_v15  ;;  %v1541_v10 = vmax.f32 %v1433_v24, 0.0  ;;  %v3409_v9 = vpack.c.bf16 %v1891_v7, %v1890_v6 }
 0x373   : > { %v1722_v18 = vpop.f32.mrf.mxu1 }
 0x374   : > { %v1723_v20 = vadd.f32 %v3306_v5, %v1722_v18  ;;  %v1798_v18 = vadd.f32 %v3306_v5, %v3384_v8 }
 0x375   : > { %v1810_v13 = vpop.f32.mrf.mxu3 }
 0x376   : > { %v1857_v27 = vmax.f32 %v1723_v20, 0.0  ;;  %v1811_v24 = vadd.f32 %v3306_v5, %v1810_v13 }
 0x377   : > { %v1434_v29 = vpop.f32.mrf.mxu0 }
 0x378   : > { %v1435_v32 = vadd.f32 %v3239_v38, %v1434_v29  ;;  %v3393_v33 = vpack.c.bf16 %v1857_v27, %v1856_v26  ;;  %v1892_v26 = vmax.f32 %v1811_v24, 0.0  ;;  %v1791_v29 = vadd.f32 %v3306_v5, %v3368_v31 }
 0x37a   : > { %1946 = vmatpush.bf16.xpose.msrb.mxu2 %v1909_v30  ;;  %v1542_v62 = vmax.f32 %v1435_v32, 0.0 }
 0x37b   : > { %v1725_v47 = vpop.f32.mrf.mxu1 }
 0x37c   : > { %v1588_v35 = vpack.c.bf16 %v1542_v62, %v1541_v10  ;;  %v1726_v44 = vadd.f32 %v3306_v5, %v1725_v47  ;;  %v1884_v47 = vmax.f32 %v1791_v29, 0.0 }
 0x37d   : > { %v1812_v20 = vpop.f32.mrf.mxu3 }
 0x37e   : > { %1764 = vmatmul.bf16.gmra.mxu1 %v1588_v35  ;;  %v1858_v53 = vmax.f32 %v1726_v44, 0.0  ;;  %v1813_v25 = vadd.f32 %v3306_v5, %v1812_v20  ;;  %v1926_v39 = vpack.c.bf16 %v1885_v34, %v1884_v47  ;;  %v1883_v44 = vmax.f32 %v1788_v37, 0.0 }
 0x37f   : > { %v1437_v41 = vpop.f32.mrf.mxu0 }
 0x380   : > { %v1438_v51 = vadd.f32 %v3239_v38, %v1437_v41  ;;  %v1893_v27 = vmax.f32 %v1813_v25, 0.0  ;;  %v1882_v41 = vmax.f32 %v1786_v42, 0.0 }
 0x382   : > { %1947 = vmatpush.bf16.xpose.msrb.mxu2 %v3352_v58  ;;  %v1543_v57 = vmax.f32 %v1438_v51, 0.0  ;;  %v3427_v8 = vpack.c.bf16 %v1893_v27, %v1892_v26 }
 0x383   : > { %v1727_v48 = vpop.f32.mrf.mxu1 }
 0x384   : > { %v1728_v49 = vadd.f32 %v3306_v5, %v1727_v48 }
 0x385   : > { %v1815_v62 = vpop.f32.mrf.mxu3 }
 0x386   : > { %v1859_v55 = vmax.f32 %v1728_v49, 0.0  ;;  %v1816_v48 = vadd.f32 %v3306_v5, %v1815_v62 }
 0x387   : > { %v1439_v56 = vpop.f32.mrf.mxu0 }
 0x388   : > { %v1440_v59 = vadd.f32 %v3239_v38, %v1439_v56  ;;  %v3404_v60 = vpack.c.bf16 %v1859_v55, %v1858_v53  ;;  %v1894_v50 = vmax.f32 %v1816_v48, 0.0  ;;  %v1781_v53 = vadd.f32 %v3306_v5, %v3348_v52 }
 0x389   : > { %v1925_v55 = vpack.c.bf16 %v1883_v44, %v1882_v41 }
 0x38a   : > { %1948 = vmatpush.bf16.xpose.msrb.mxu2 %v3338_v28  ;;  %v1544_v61 = vmax.f32 %v1440_v59, 0.0 }
 0x38b   : > { %v1730_v63 = vpop.f32.mrf.mxu1 }
 0x38c   : > { %v1589_v58 = vpack.c.bf16 %v1544_v61, %v1543_v57  ;;  %v1731_v12 = vadd.f32 %v3306_v5, %v1730_v63  ;;  %v1880_v63 = vmax.f32 %v1781_v53, 0.0 }
 0x38e   : > { %1769 = vmatmul.bf16.gmra.mxu1 %v1589_v58  ;;  %v1860_v14 = vmax.f32 %v1731_v12, 0.0  ;;  %v1924_v6 = vpack.c.bf16 %v1881_v0, %v1880_v63 }
 0x392   : > { %1949 = vmatpush.bf16.xpose.msrb.mxu2 %v3330_v4  ;;  %v1887_v4 = vmax.f32 %v1798_v18, 0.0 }
 0x393   : > { %v1732_v38 = vpop.f32.mrf.mxu1 }
 0x394   : > { %v1733_v28 = vadd.f32 %v3306_v5, %v1732_v38  ;;  %v1927_v30 = vpack.c.bf16 %v1887_v4, %v1886_v21 }
 0x396   : > { %v1861_v15 = vmax.f32 %v1733_v28, 0.0 }
 0x398   : > { %v3414_v16 = vpack.c.bf16 %v1861_v15, %v1860_v14 }
 0x39a   : > { %1950 = vmatpush.bf16.xpose.msrb.mxu2 %v3322_v46 }
 0x39b   : > { %v1735_v19 = vpop.f32.mrf.mxu1 }
 0x39c   : > { %v1736_v46 = vadd.f32 %v3306_v5, %v1735_v19 }
 0x39e   : > { %v1862_v35 = vmax.f32 %v1736_v46, 0.0 }
 0x3a2   : > { %1951 = vmatpush.bf16.xpose.msrb.mxu2 %v3314_v22  ;;  %v1817_v22 = vpop.f32.mrf.mxu3 }
 0x3a3   : > { %v1737_v10 = vpop.f32.mrf.mxu1  ;;  %v1818_v49 = vadd.f32 %v3306_v5, %v1817_v22 }
 0x3a4   : > { %v1738_v32 = vadd.f32 %v3306_v5, %v1737_v10 }
 0x3a5   : > { %v1895_v51 = vmax.f32 %v1818_v49, 0.0 }
 0x3a6   : > { %v1863_v36 = vmax.f32 %v1738_v32, 0.0 }
 0x3a7   : > { %v3444_v23 = vpack.c.bf16 %v1895_v51, %v1894_v50 }
 0x3a8   : > { %v3432_v31 = vpack.c.bf16 %v1863_v36, %v1862_v35 }
 0x3aa   : > { %1970 = vmatpush.bf16.xpose.msra.mxu2 %v1927_v30  ;;  %v1820_v61 = vpop.f32.mrf.mxu3 }
 0x3ab   : > { %v1740_v40 = vpop.f32.mrf.mxu1  ;;  %v1821_v2 = vadd.f32 %v3306_v5, %v1820_v61 }
 0x3ac   : > { %v1741_v56 = vadd.f32 %v3306_v5, %v1740_v40 }
 0x3ad   : > { %v1896_v38 = vmax.f32 %v1821_v2, 0.0 }
 0x3ae   : > { %v1864_v58 = vmax.f32 %v1741_v56, 0.0 }
 0x3b2   : > { %1971 = vmatpush.bf16.xpose.msra.mxu2 %v1926_v39  ;;  %v1822_v7 = vpop.f32.mrf.mxu3 }
 0x3b3   : > { %v1742_v57 = vpop.f32.mrf.mxu1  ;;  %v1823_v12 = vadd.f32 %v3306_v5, %v1822_v7 }
 0x3b4   : > { %v1743_v59 = vadd.f32 %v3306_v5, %v1742_v57 }
 0x3b5   : > { %v1897_v28 = vmax.f32 %v1823_v12, 0.0 }
 0x3b6   : > { %v1865_v1 = vmax.f32 %v1743_v59, 0.0 }
 0x3b7   : > { %v3450_v13 = vpack.c.bf16 %v1897_v28, %v1896_v38 }
 0x3b8   : > { %v1916_v3 = vpack.c.bf16 %v1865_v1, %v1864_v58 }
 0x3ba   : > { %1972 = vmatpush.bf16.xpose.msra.mxu2 %v1925_v55  ;;  %v1825_v4 = vpop.f32.mrf.mxu3 }
 0x3bb   : > { %v1745_v52 = vpop.f32.mrf.mxu1  ;;  %v1826_v28 = vadd.f32 %v3306_v5, %v1825_v4 }
 0x3bc   : > { %v1746_v62 = vadd.f32 %v3306_v5, %v1745_v52 }
 0x3be   : > { %v1866_v35 = vmax.f32 %v1746_v62, 0.0 }
 0x3c2   : > { %1973 = vmatpush.bf16.xpose.msra.mxu2 %v1924_v6  ;;  %v1827_v46 = vpop.f32.mrf.mxu3 }
 0x3c3   : > { %v1747_v14 = vpop.f32.mrf.mxu1 }
 0x3c4   : > { %v1748_v10 = vadd.f32 %v3306_v5, %v1747_v14  ;;  %v1828_v14 = vadd.f32 %v3306_v5, %v1827_v46 }
 0x3c6   : > { %v1867_v34 = vmax.f32 %v1748_v10, 0.0 }
 0x3c8   : > { %v1917_v36 = vpack.c.bf16 %v1867_v34, %v1866_v35 }
 0x3ca   : > { %1974 = vmatpush.bf16.xpose.msra.mxu2 %v3344_v45  ;;  %v1830_v42 = vpop.f32.mrf.mxu3 }
 0x3cb   : > { %v1750_v15 = vpop.f32.mrf.mxu1 }
 0x3cc   : > { %v1751_v29 = vadd.f32 %v3306_v5, %v1750_v15 }
 0x3ce   : > { %v1868_v45 = vmax.f32 %v1751_v29, 0.0 }
 0x3d2   : > { %v1832_v39 = vpop.f32.mrf.mxu3 }
 0x3d3   : > { %v1752_v17 = vpop.f32.mrf.mxu1  ;;  %v1833_v6 = vadd.f32 %v3306_v5, %v1832_v39 }
 0x3d4   : > { %v1753_v26 = vadd.f32 %v3306_v5, %v1752_v17  ;;  %v1936_v17 = vld [vmem:[%s3610_s11] sm:$0x1] }
 0x3d5   : > { %v1901_v12 = vmax.f32 %v1833_v6, 0.0  ;;  %1952 = vmatmul.bf16.vlgmr.msrb.gmra.mxu2 %v1936_v17 }
 0x3d6   : > { %v1869_v30 = vmax.f32 %v1753_v26, 0.0 }
 0x3d8   : > { %v1918_v32 = vpack.c.bf16 %v1869_v30, %v1868_v45 }
 0x3da   : > { %v1835_v41 = vpop.f32.mrf.mxu3 }
 0x3db   : > { %v1755_v18 = vpop.f32.mrf.mxu1  ;;  %v1836_v57 = vadd.f32 %v3306_v5, %v1835_v41 }
 0x3dc   : > { %v1756_v19 = vadd.f32 %v3306_v5, %v1755_v18  ;;  %v1899_v18 = vmax.f32 %v1828_v14, 0.0 }
 0x3de   : > { %v1870_v24 = vmax.f32 %v1756_v19, 0.0 }
 0x3e2   : > { %v1837_v51 = vpop.f32.mrf.mxu3 }
 0x3e3   : > { %v1757_v20 = vpop.f32.mrf.mxu1 }
 0x3e4   : > { %v1758_v21 = vadd.f32 %v3306_v5, %v1757_v20  ;;  %v2794_v20 = vmov 0  }
 0x3e5   : > { %2502 = vset.pattern.permute.xlu0 %v2794_v20 }
 0x3e6   : > { %v1871_v25 = vmax.f32 %v1758_v21, 0.0  ;;  %v1937_v21 = vld [vmem:[#allocation3] sm:$0x1] }
 0x3e7   : > { %1940 = vperm.xlu0 %2502, %v1937_v21  }
 0x3e8   : > { %v1919_v27 = vpack.c.bf16 %v1871_v25, %v1870_v24 }
 0x3ea   : > { %1957 = vmatpush.bf16.xpose.msrb.mxu3 %v1919_v27 }
 0x3eb   : > { %v1760_v54 = vpop.f32.mrf.mxu1 }
 0x3ec   : > { %v1761_v58 = vadd.f32 %v3306_v5, %v1760_v54 }
 0x3f2   : > { %1958 = vmatpush.bf16.xpose.msrb.mxu3 %v1918_v32 }
 0x3f3   : > { %v1762_v47 = vpop.f32.mrf.mxu1 }
 0x3f4   : > { %v1763_v1 = vadd.f32 %v3306_v5, %v1762_v47 }
 0x3f6   : > { %v1873_v7 = vmax.f32 %v1763_v1, 0.0 }
 0x3fa   : > { %1959 = vmatpush.bf16.xpose.msrb.mxu3 %v1917_v36 }
 0x3fb   : > { %v1765_v37 = vpop.f32.mrf.mxu1 }
 0x3fc   : > { %v1766_v53 = vadd.f32 %v3306_v5, %v1765_v37 }
 0x3fe   : > { %v1874_v59 = vmax.f32 %v1766_v53, 0.0 }
 0x402   : > { %1960 = vmatpush.bf16.xpose.msrb.mxu3 %v1916_v3  ;;  %v1831_v3 = vadd.f32 %v3306_v5, %v1830_v42 }
 0x403   : > { %v1767_v40 = vpop.f32.mrf.mxu1 }
 0x404   : > { %v1768_v11 = vadd.f32 %v3306_v5, %v1767_v40  ;;  %v1900_v2 = vmax.f32 %v1831_v3, 0.0 }
 0x406   : > { %v1875_v61 = vmax.f32 %v1768_v11, 0.0  ;;  %v1934_v15 = vpack.c.bf16 %v1901_v12, %v1900_v2 }
 0x408   : > { %v1921_v0 = vpack.c.bf16 %v1875_v61, %v1874_v59 }
 0x40a   : > { %1961 = vmatpush.bf16.xpose.msrb.mxu3 %v3432_v31  ;;  %v1838_v31 = vadd.f32 %v3306_v5, %v1837_v51 }
 0x40b   : > { %v1770_v22 = vpop.f32.mrf.mxu1 }
 0x40c   : > { %v1771_v44 = vadd.f32 %v3306_v5, %v1770_v22  ;;  %v1903_v63 = vmax.f32 %v1838_v31, 0.0 }
 0x40e   : > { %v1876_v49 = vmax.f32 %v1771_v44, 0.0 }
 0x412   : > { %1962 = vmatpush.bf16.xpose.msrb.mxu3 %v3414_v16  ;;  %v1902_v16 = vmax.f32 %v1836_v57, 0.0 }
 0x413   : > { %v1772_v48 = vpop.f32.mrf.mxu1 }
 0x414   : > { %v1773_v50 = vadd.f32 %v3306_v5, %v1772_v48  ;;  %v1935_v52 = vpack.c.bf16 %v1903_v63, %v1902_v16 }
 0x416   : > { %v1877_v55 = vmax.f32 %v1773_v50, 0.0 }
 0x418   : > { %v1922_v56 = vpack.c.bf16 %v1877_v55, %v1876_v49 }
 0x41a   : > { %1963 = vmatpush.bf16.xpose.msrb.mxu3 %v3404_v60  ;;  %1975 = vmatpush.bf16.xpose.msra.mxu2 %v1922_v56  ;;  %v1872_v60 = vmax.f32 %v1761_v58, 0.0 }
 0x41c   : > { %v1920_v38 = vpack.c.bf16 %v1873_v7, %v1872_v60 }
 0x422   : > { %1964 = vmatpush.bf16.xpose.msrb.mxu3 %v3393_v33  ;;  %1976 = vmatpush.bf16.xpose.msra.mxu2 %v1921_v0  ;;  %v1898_v33 = vmax.f32 %v1826_v28, 0.0 }
 0x424   : > { %v1933_v19 = vpack.c.bf16 %v1899_v18, %v1898_v33 }
 0x429   : > { %1965 = vmatmul.bf16.vlgmr.msrb.gmra.mxu3 %v1936_v17 }
 0x42a   : > { %1983 = vmatpush.bf16.xpose.msra.mxu3 %v1935_v52  ;;  %1977 = vmatpush.bf16.xpose.msra.mxu2 %v1920_v38 }
 0x431   : > { %1978 = vmatmul.bf16.vlgmr.msra.gmra.mxu2 %v1936_v17 }
 0x432   : > { %1984 = vmatpush.bf16.xpose.msra.mxu3 %v1934_v15 }
 0x43a   : > { %1985 = vmatpush.bf16.xpose.msra.mxu3 %v1933_v19 }
 0x442   : > { %1986 = vmatpush.bf16.xpose.msra.mxu3 %v3450_v13 }
 0x44a   : > { %1987 = vmatpush.bf16.xpose.msra.mxu3 %v3444_v23  ;;  %v2010_v23 = vlaneseq }
 0x44c   : > { %vm2012_vm3 = vcmp.lt.s32.totalorder %v2010_v23, 512 }
 0x452   : > { %1988 = vmatpush.bf16.xpose.msra.mxu3 %v3427_v8 }
 0x458   : > { %v1953_v4 = vpop.f32.mrf.mxu2 }
 0x459   : > { %v1941_v27 = vpop.permute.xlu0 %1940 }
 0x45a   : > { %1989 = vmatpush.bf16.xpose.msra.mxu3 %v3409_v9  ;;  %v1943_v29 = vperm.slane %v1941_v27, 0 }
 0x45c   : > { %v1954_v46 = vadd.f32 %v1953_v4, %v1943_v29 }
 0x460   : > { %v1955_v25 = vpop.f32.mrf.mxu2 }
 0x462   : > { %1990 = vmatpush.bf16.xpose.msra.mxu3 %v3397_v43 }
 0x469   : > { %1991 = vmatmul.bf16.vlgmr.msra.gmra.mxu3 %v1936_v17 }
 0x4ac   : > { %v1966_v5 = vpop.f32.mrf.mxu3 }
 0x4ad   : > { %v1967_v54 = vadd.f32 %v1966_v5, %v1943_v29 }
 0x4af   : > { %v2000_v8 = vrot.slane %v1967_v54, 7 }
 0x4b1   : > { %v2004_v32 = vsel %vm2003_vm0, %v1954_v46, %v2000_v8 }
 0x4b4   : > { %v1968_v24 = vpop.f32.mrf.mxu3  ;;  %v1979_v26 = vpop.f32.mrf.mxu2 }
 0x4b5   : > { %v1980_v30 = vadd.f32 %v1979_v26, %v1943_v29 }
 0x4b7   : > { %v2001_v10 = vrot.slane %v1980_v30, 6 }
 0x4bc   : > { %v1981_v13 = vpop.f32.mrf.mxu2 }
 0x4ec   : > { %v1992_v45 = vpop.f32.mrf.mxu3 }
 0x4ed   : > { %v1993_v9 = vadd.f32 %v1992_v45, %v1943_v29 }
 0x4ef   : > { %v2002_v43 = vrot.slane %v1993_v9, 5 }
 0x4f1   : > { %v2006_v62 = vsel %vm2005_vm1, %v2001_v10, %v2002_v43 }
 0x4f2   : > { %v2008_v47 = vsel %vm2007_vm2, %v2004_v32, %v2006_v62 }
 0x4f3   : > { %2014 = vst.msk [vmem:[%s445_s27] sm:$0xf] %vm2012_vm3, %v2008_v47 }
 0x4f4   : > { %v1994_v34 = vpop.f32.mrf.mxu3 }
 0x4f5 PF: > { %s3611_s5 = sld [smem:[#allocation21_spill]]  ;;  %s2028_s24 = sshll.u32 %s445_s27, 4  ;;  %s2029_s24 = int_to_ptr.vmem [resolvable:$true] %s2028_s24 }
 0x4f6   : > { %s3613_s13 = sld [smem:[#allocation36_spill]]  ;;  %s2016_s28 = scalar_lea.sflag [#allocation6], %s443_s26 }
 0x4fb   : > { %s2274_s3 = sshll.u32 %s3611_s5, 2 }
 0x4fc   : > { %s3614_s30 = smov %s3613_s13  ;;  %s2026_s4 = scalar_lea.hbm %s3613_s13, %s2274_s3 }
 0x4fd   : > { %s2030_s29 = sshll.u32 %s2026_s4, 4  ;;  %s2646_s10 = scalar_lea.hbm %s3614_s30, 8  ;;  %s2031_s29 = int_to_ptr.hbm [resolvable:$true] %s2030_s29 }
 0x4fe   : > { %s2640_s19 = sshra.s32 %s2031_s29, 4  ;;  %s2641_s19 = int_to_ptr.hbm [resolvable:$true] %s2640_s19 }
 0x4ff   : > { %s2642_s14 = scalar_lea.hbm %s2641_s19, 4  ;;  %p2647_p10 = scmp.lt.s32.totalorder %s2641_s19, %s3614_s30 }
 0x500   : > { %p2643_p6 = scmp.ne.s32.totalorder %s2641_s19, %s2642_s14  ;;  %p2648_p0 = scmp.lt.s32.totalorder %s2646_s10, %s2642_s14 }
 0x502   : > { %p2644_p13 = pnand %p2643_p6, %p2938_p8  ;;  %p2649_p3 = por %p2648_p0, %p2647_p10 }
 0x504   : > { %p2645_p7 = pneg %p2644_p13 }
 0x506   : > { %p2650_p5 = pnand %p2649_p3, %p2645_p7 }
 0x508   : > { %2653 = shalt.err (!%p2650_p5)
}
 0x509   : > { %2355 = dma.vmem_to_hbm [thread:$0]  (%p2938_p8), %s2029_s24, 64, %s2031_s29, %s2016_s28  }
 0x50a PF: > { %s3615_s26 = sld [smem:[#allocation18_spill]]  ;;  %p2380_p9 = scmp.ge.s32.totalorder %s2784_s23, 2 }
 0x50c   : > { %p2372_p2 = pnand %p2380_p9, %p2944_p12 }
 0x50e   : > { %p2373_p11 = pneg %p2372_p2 }
 0x510   : > { %s2042_s27 = sand.u32 1, %s3615_s26  }
 0x511   : > { %s2043_s22 = scalar_lea.sflag [#allocation6], %s2042_s27 }
 0x512   : > { %2727 = dma.done.wait (%p2373_p11), %s2043_s22, 64  }
 0x513   : > { %2729 = vsyncadd (%p2373_p11), %s2043_s22, 4294967232  ;;  %s31_s23 = sadd.s32 1, %s2784_s23   ;;  %s3618_s5 = sld [smem:[#allocation19_spill]] }
 0x514   : > { %p3508_p4 = scmp.ge.s32.totalorder %s31_s23, 6   ;;  %s3619_s13 = sld [smem:[#allocation27_spill]] }
 0x515   : > { %s3620_s7 = sld [smem:[#allocation20_spill]]  ;;  %s3626_s11 = smov %s2736_s12 }
 0x516   : > { %s3621_s3 = sld [smem:[#allocation28_spill]]  ;;  %s3628_s14 = smov %s2748_s15 }
 0x517   : > { %s3622_s20 = sld [smem:[#allocation22_spill]]  ;;  %s3629_s15 = smov %s2752_s16 }
 0x518   : > { %s3623_s9 = sld [smem:[#allocation25_spill]]  ;;  %s3630_s16 = smov %s3018_s18 }
 0x519   : > { %s3624_s22 = sld [smem:[#allocation26_spill]]  ;;  %s3627_s12 = smov %s3618_s5 }
 0x51a   : > { %s3631_s8 = smov %s2760_s17  ;;  %s3634_s19 = smov %s2776_s21 }
 0x51b   : > { %s3632_s17 = smov %s3620_s7  ;;  %30 = sbr.rel (!%p3508_p4) target bundleno = 22 (0x16), region = 130 }
 0x51c   : > { %s3633_s18 = smov %s3621_s3 }
 0x51e   : > { %s3635_s21 = smov %s3623_s9 }
 0x520   :  { %2049 = vsyncpa [#allocation5], 1 }
 0x521   :  { %2051 = vsyncpa [#allocation5 + $0x1], 1 }
 0x522   :  { %2052 = vsyncpa [#allocation8], 1 }
 0x523   :  { %2054 = vsyncpa [#allocation8 + $0x1], 1 }
 0x524   :  { %2055 = vsyncpa [#allocation11], 1 }
 0x525   :  { %2056 = vsyncpa [#allocation6], 1 }
 0x526   :  { %2058 = vsyncpa [#allocation6 + $0x1], 1 }

</bundles_post_ra>
